<compile_context>
chip_gen: v6e
topology: v6e:2x2x1
jax: 0.10.0
libtpu: 0.0.40
codegen_flags: <defaults>
</compile_context>

<pallas_src>
import jax
import jax.numpy as jnp
from jax.experimental import pallas as pl
from jax.experimental.pallas import tpu as pltpu

# ---------------- config (small synthetic shapes) ----------------
HIDDEN = 32
N_HEADS = 2
HEAD_DIM = HIDDEN // N_HEADS
FFN = 4 * HIDDEN
NUM_CLASSES = 3          # e.g. {table, table-rotated, background}
VOCAB = 100
MAX_POS = 64
COORD_BUCKETS = 128
N_LAYERS = 2
EPS = 1e-12

B = 2
SEQ = 8                  # text tokens
IMG = 16                 # image spatial size (stand-in for 224)
CH = 3
PATCH = 8                # -> 2x2 = 4 visual tokens
N_PATCH = (IMG // PATCH) ** 2
PATCH_DIM = CH * PATCH * PATCH
S_TOT = SEQ + N_PATCH    # real sequence length (12)
S_PAD = 16               # sublane-aligned padded sequence length
DET_OUT = NUM_CLASSES + 4 + 1   # fused decoder output width (3 cls + 4 box + 1 pad) = 8


# ---------------- helpers ----------------
def _full_spec(shape):
    """BlockSpec covering a whole (weight) array; same block every grid step."""
    n = len(shape)
    return pl.BlockSpec(shape, lambda b, _n=n: (0,) * _n)


def _ln(x, g, b):
    mu = jnp.mean(x, axis=-1, keepdims=True)
    var = jnp.mean((x - mu) ** 2, axis=-1, keepdims=True)
    return (x - mu) * jax.lax.rsqrt(var + EPS) * g + b


# ---------------- fused forward kernel (one batch element per grid step) --------
def _fused_kernel(text_ref, patch_ref,
                  w_patch, b_patch, vis_pos, emb_g, emb_b,
                  wqkv, bqkv, wo, bo, ln1_g, ln1_b,
                  w1, b1, w2, b2, ln2_g, ln2_b,
                  dw1, db1, dw_out, db_out,
                  hid_ref, det_ref):
    # ----- visual patch embedding (conv-as-matmul) -----
    vis = jnp.dot(patch_ref[0], w_patch[...], preferred_element_type=jnp.float32)
    vis = vis + b_patch[...] + vis_pos[...]                         # [N_PATCH, H]
    # TODO(synk): LayoutLMv2 also adds 2D-bbox embeddings to visual tokens; omitted.

    # ----- concat text | visual | pad rows -> [S_PAD, H], embedding LayerNorm ----
    pad = jnp.zeros((S_PAD - S_TOT, HIDDEN), jnp.float32)
    x = jnp.concatenate([text_ref[0], vis, pad], axis=0)            # [S_PAD, H]
    x = _ln(x, emb_g[...], emb_b[...])

    # additive attention mask: padded key positions are excluded
    key_pos = jax.lax.broadcasted_iota(jnp.int32, (S_PAD, S_PAD), 1)
    attn_mask = jnp.where(key_pos < S_TOT, 0.0, -1e9).astype(jnp.float32)

    scale = 1.0 / (HEAD_DIM ** 0.5)

    # ----- encoder layers (statically unrolled, weights stacked on axis 0) -----
    for l in range(N_LAYERS):
        qkv = jnp.dot(x, wqkv[l], preferred_element_type=jnp.float32) + bqkv[l]  # [S_PAD, 3H]
        wo_l = wo[l]
        attn = jnp.zeros((S_PAD, HIDDEN), jnp.float32)
        for h in range(N_HEADS):                                    # static head loop
            qh = qkv[:, h * HEAD_DIM:(h + 1) * HEAD_DIM] * scale
            kh = qkv[:, HIDDEN + h * HEAD_DIM:HIDDEN + (h + 1) * HEAD_DIM]
            vh = qkv[:, 2 * HIDDEN + h * HEAD_DIM:2 * HIDDEN + (h + 1) * HEAD_DIM]
            s = jnp.dot(qh, kh.T, preferred_element_type=jnp.float32) + attn_mask
            s = s - jnp.max(s, axis=-1, keepdims=True)
            p = jnp.exp(s)
            p = p * pl.reciprocal(jnp.sum(p, axis=-1, keepdims=True), approx=True)
            oh = jnp.dot(p, vh, preferred_element_type=jnp.float32)              # [S_PAD, HEAD_DIM]
            # accumulate through the matching slice of Wo (avoids head concat)
            attn = attn + jnp.dot(oh, wo_l[h * HEAD_DIM:(h + 1) * HEAD_DIM, :],
                                  preferred_element_type=jnp.float32)
        attn = attn + bo[l]
        x = _ln(x + attn, ln1_g[l], ln1_b[l])                       # post-LN residual

        ffn = jnp.dot(x, w1[l], preferred_element_type=jnp.float32) + b1[l]
        # TODO(synk): PyTorch nn.GELU defaults to exact erf; tanh approximation used here.
        ffn = jax.nn.gelu(ffn)
        ffn = jnp.dot(ffn, w2[l], preferred_element_type=jnp.float32) + b2[l]
        x = _ln(x + ffn, ln2_g[l], ln2_b[l])

    hid_ref[0] = x                                                  # last_hidden_state (padded)

    # ----- detection decoder head (fused cls|box output, lane-dense 8 wide) -----
    h1 = jax.nn.relu(jnp.dot(x, dw1[...], preferred_element_type=jnp.float32) + db1[...])
    raw = jnp.dot(h1, dw_out[...], preferred_element_type=jnp.float32) + db_out[...]  # [S_PAD, 8]
    lane = jax.lax.broadcasted_iota(jnp.int32, raw.shape, 1)
    det_ref[0] = jnp.where(lane < NUM_CLASSES, raw, jax.nn.sigmoid(raw))


# ---------------- pallas_call wrapper ----------------
def fused_forward(text_emb, patches, p):
    Bn = text_emb.shape[0]
    weights = (p["w_patch"], p["b_patch"], p["vis_pos_emb"], p["emb_ln_g"], p["emb_ln_b"],
               p["wqkv"], p["bqkv"], p["wo"], p["bo"], p["ln1_g"], p["ln1_b"],
               p["w1"], p["b1"], p["w2"], p["b2"], p["ln2_g"], p["ln2_b"],
               p["dec_w1"], p["dec_b1"], p["dec_w_out"], p["dec_b_out"])
    w_specs = [_full_spec(w.shape) for w in weights]
    return pl.pallas_call(
        _fused_kernel,
        out_shape=(jax.ShapeDtypeStruct((Bn, S_PAD, HIDDEN), jnp.float32),
                   jax.ShapeDtypeStruct((Bn, S_PAD, DET_OUT), jnp.float32)),
        grid=(Bn,),
        in_specs=[pl.BlockSpec((1, SEQ, HIDDEN), lambda i: (i, 0, 0)),
                  pl.BlockSpec((1, N_PATCH, PATCH_DIM), lambda i: (i, 0, 0))] + w_specs,
        out_specs=(pl.BlockSpec((1, S_PAD, HIDDEN), lambda i: (i, 0, 0)),
                   pl.BlockSpec((1, S_PAD, DET_OUT), lambda i: (i, 0, 0))),
        compiler_params=pltpu.CompilerParams(dimension_semantics=("parallel",)),
    )(text_emb, patches, *weights)


# ---------------- deterministic parameter init ----------------
def init_params(key):
    def nrm(k, shape, scale=0.02):
        return scale * jax.random.normal(k, shape, jnp.float32)

    keys = iter(jax.random.split(key, 64))
    p = {
        "word_emb": nrm(next(keys), (VOCAB, HIDDEN)),
        "pos_emb": nrm(next(keys), (MAX_POS, HIDDEN)),
        "x_emb": nrm(next(keys), (COORD_BUCKETS, HIDDEN)),
        "y_emb": nrm(next(keys), (COORD_BUCKETS, HIDDEN)),
        "vis_pos_emb": nrm(next(keys), (N_PATCH, HIDDEN)),
        "w_patch": nrm(next(keys), (PATCH_DIM, HIDDEN)),
        "b_patch": jnp.zeros((1, HIDDEN), jnp.float32),
        "emb_ln_g": jnp.ones((1, HIDDEN), jnp.float32),
        "emb_ln_b": jnp.zeros((1, HIDDEN), jnp.float32),
    }

    # encoder layers: QKV fused, weights stacked over a leading layer axis
    wqkv_l, wo_l, w1_l, w2_l = [], [], [], []
    for _ in range(N_LAYERS):
        wq = nrm(next(keys), (HIDDEN, HIDDEN))
        wk = nrm(next(keys), (HIDDEN, HIDDEN))
        wv = nrm(next(keys), (HIDDEN, HIDDEN))
        wqkv_l.append(jnp.concatenate([wq, wk, wv], axis=1))        # [H, 3H]
        wo_l.append(nrm(next(keys), (HIDDEN, HIDDEN)))
        w1_l.append(nrm(next(keys), (HIDDEN, FFN)))
        w2_l.append(nrm(next(keys), (FFN, HIDDEN)))
    p["wqkv"] = jnp.stack(wqkv_l)                                    # [L, H, 3H]
    p["bqkv"] = jnp.zeros((N_LAYERS, 1, 3 * HIDDEN), jnp.float32)
    p["wo"] = jnp.stack(wo_l)                                        # [L, H, H]
    p["bo"] = jnp.zeros((N_LAYERS, 1, HIDDEN), jnp.float32)
    p["ln1_g"] = jnp.ones((N_LAYERS, 1, HIDDEN), jnp.float32)
    p["ln1_b"] = jnp.zeros((N_LAYERS, 1, HIDDEN), jnp.float32)
    p["w1"] = jnp.stack(w1_l)                                        # [L, H, FFN]
    p["b1"] = jnp.zeros((N_LAYERS, 1, FFN), jnp.float32)
    p["w2"] = jnp.stack(w2_l)                                        # [L, FFN, H]
    p["b2"] = jnp.zeros((N_LAYERS, 1, HIDDEN), jnp.float32)
    p["ln2_g"] = jnp.ones((N_LAYERS, 1, HIDDEN), jnp.float32)
    p["ln2_b"] = jnp.zeros((N_LAYERS, 1, HIDDEN), jnp.float32)

    # decoder: fused (cls | box | pad) output head -> lane-denser [H, 8]
    w_cls = nrm(next(keys), (HIDDEN, NUM_CLASSES))
    w_box = nrm(next(keys), (HIDDEN, 4))
    p["dec_w1"] = nrm(next(keys), (HIDDEN, HIDDEN))
    p["dec_b1"] = jnp.zeros((1, HIDDEN), jnp.float32)
    p["dec_w_out"] = jnp.concatenate(
        [w_cls, w_box, jnp.zeros((HIDDEN, DET_OUT - NUM_CLASSES - 4), jnp.float32)], axis=1)
    p["dec_b_out"] = jnp.zeros((1, DET_OUT), jnp.float32)
    return p


# ---------------- forward pass (gathers in XLA glue, hot path fused in Pallas) ---
def table_detection_forward(params, token_ids, bboxes, image):
    # ----- text embeddings (gathers = glue; no clean tiny-Pallas equivalent) -----
    tok = jnp.take(params["word_emb"], token_ids, axis=0)                    # [B, S, H]
    pos = jnp.take(params["pos_emb"], jnp.arange(SEQ), axis=0)[None]         # [1, S, H]
    bx = (jnp.take(params["x_emb"], bboxes[..., 0], axis=0)
          + jnp.take(params["x_emb"], bboxes[..., 2], axis=0))
    by = (jnp.take(params["y_emb"], bboxes[..., 1], axis=0)
          + jnp.take(params["y_emb"], bboxes[..., 3], axis=0))
    text_emb = tok + pos + bx + by                                           # [B, S, H]

    # ----- image -> non-overlapping patches [B, P, C*ph*pw] -----
    Bn = image.shape[0]
    g = IMG // PATCH
    patches = image.reshape(Bn, CH, g, PATCH, g, PATCH)
    patches = patches.transpose(0, 2, 4, 1, 3, 5).reshape(Bn, N_PATCH, PATCH_DIM)

    # ----- fused Pallas kernel: patch-embed + emb-LN + encoder + decoder -----
    hid, det = fused_forward(text_emb, patches, params)

    last_hidden = hid[:, :S_TOT, :]
    cls_logits = det[:, :S_TOT, :NUM_CLASSES]
    boxes = det[:, :S_TOT, NUM_CLASSES:NUM_CLASSES + 4]
    return {"last_hidden_state": last_hidden,
            "class_logits": cls_logits,
            "pred_boxes": boxes}


if __name__ == "__main__":
    key = jax.random.PRNGKey(0)
    k_par, k_tok, k_box, k_img = jax.random.split(key, 4)

    params = init_params(k_par)
    token_ids = jax.random.randint(k_tok, (B, SEQ), 0, VOCAB, dtype=jnp.int32)
    bboxes = jax.random.randint(k_box, (B, SEQ, 4), 0, COORD_BUCKETS, dtype=jnp.int32)
    image = jax.random.normal(k_img, (B, CH, IMG, IMG), jnp.float32)          # NCHW

    fwd = jax.jit(table_detection_forward)
    out = fwd(params, token_ids, bboxes, image)
    jax.block_until_ready(out)

    assert out["last_hidden_state"].shape == (B, S_TOT, HIDDEN)
    assert out["class_logits"].shape == (B, S_TOT, NUM_CLASSES)
    assert out["pred_boxes"].shape == (B, S_TOT, 4)
    assert bool(jnp.all(jnp.isfinite(out["last_hidden_state"])))
    print("KERNEL_OK")
</pallas_src>

<mosaic_0001>
module attributes {stable_mosaic.version = 11 : i64} {
  func.func @_fused_kernel(%arg0: i32, %arg1: memref<1x8x32xf32, #tpu.memory_space<vmem>>, %arg2: memref<1x4x192xf32, #tpu.memory_space<vmem>>, %arg3: memref<192x32xf32, #tpu.memory_space<vmem>>, %arg4: memref<1x32xf32, #tpu.memory_space<vmem>>, %arg5: memref<4x32xf32, #tpu.memory_space<vmem>>, %arg6: memref<1x32xf32, #tpu.memory_space<vmem>>, %arg7: memref<1x32xf32, #tpu.memory_space<vmem>>, %arg8: memref<2x32x96xf32, #tpu.memory_space<vmem>>, %arg9: memref<2x1x96xf32, #tpu.memory_space<vmem>>, %arg10: memref<2x32x32xf32, #tpu.memory_space<vmem>>, %arg11: memref<2x1x32xf32, #tpu.memory_space<vmem>>, %arg12: memref<2x1x32xf32, #tpu.memory_space<vmem>>, %arg13: memref<2x1x32xf32, #tpu.memory_space<vmem>>, %arg14: memref<2x32x128xf32, #tpu.memory_space<vmem>>, %arg15: memref<2x1x128xf32, #tpu.memory_space<vmem>>, %arg16: memref<2x128x32xf32, #tpu.memory_space<vmem>>, %arg17: memref<2x1x32xf32, #tpu.memory_space<vmem>>, %arg18: memref<2x1x32xf32, #tpu.memory_space<vmem>>, %arg19: memref<2x1x32xf32, #tpu.memory_space<vmem>>, %arg20: memref<32x32xf32, #tpu.memory_space<vmem>>, %arg21: memref<1x32xf32, #tpu.memory_space<vmem>>, %arg22: memref<32x8xf32, #tpu.memory_space<vmem>>, %arg23: memref<1x8xf32, #tpu.memory_space<vmem>>, %arg24: memref<1x16x32xf32, #tpu.memory_space<vmem>>, %arg25: memref<1x16x8xf32, #tpu.memory_space<vmem>>) attributes {dimension_semantics = [#tpu.dimension_semantics<parallel>], iteration_bounds = array<i64: 2>, scalar_prefetch = 0 : i64, scratch_operands = 0 : i64, tpu.core_type = #tpu.core_type<tc>, window_params = [{transform_indices = @transform_0, window_bounds = array<i64: 1, 8, 32>}, {transform_indices = @transform_1, window_bounds = array<i64: 1, 4, 192>}, {pipeline_mode = #tpu.pipeline_mode<synchronous>, transform_indices = @transform_2, window_bounds = array<i64: 192, 32>}, {pipeline_mode = #tpu.pipeline_mode<synchronous>, transform_indices = @transform_3, window_bounds = array<i64: 1, 32>}, {pipeline_mode = #tpu.pipeline_mode<synchronous>, transform_indices = @transform_4, window_bounds = array<i64: 4, 32>}, {pipeline_mode = #tpu.pipeline_mode<synchronous>, transform_indices = @transform_5, window_bounds = array<i64: 1, 32>}, {pipeline_mode = #tpu.pipeline_mode<synchronous>, transform_indices = @transform_6, window_bounds = array<i64: 1, 32>}, {pipeline_mode = #tpu.pipeline_mode<synchronous>, transform_indices = @transform_7, window_bounds = array<i64: 2, 32, 96>}, {pipeline_mode = #tpu.pipeline_mode<synchronous>, transform_indices = @transform_8, window_bounds = array<i64: 2, 1, 96>}, {pipeline_mode = #tpu.pipeline_mode<synchronous>, transform_indices = @transform_9, window_bounds = array<i64: 2, 32, 32>}, {pipeline_mode = #tpu.pipeline_mode<synchronous>, transform_indices = @transform_10, window_bounds = array<i64: 2, 1, 32>}, {pipeline_mode = #tpu.pipeline_mode<synchronous>, transform_indices = @transform_11, window_bounds = array<i64: 2, 1, 32>}, {pipeline_mode = #tpu.pipeline_mode<synchronous>, transform_indices = @transform_12, window_bounds = array<i64: 2, 1, 32>}, {pipeline_mode = #tpu.pipeline_mode<synchronous>, transform_indices = @transform_13, window_bounds = array<i64: 2, 32, 128>}, {pipeline_mode = #tpu.pipeline_mode<synchronous>, transform_indices = @transform_14, window_bounds = array<i64: 2, 1, 128>}, {pipeline_mode = #tpu.pipeline_mode<synchronous>, transform_indices = @transform_15, window_bounds = array<i64: 2, 128, 32>}, {pipeline_mode = #tpu.pipeline_mode<synchronous>, transform_indices = @transform_16, window_bounds = array<i64: 2, 1, 32>}, {pipeline_mode = #tpu.pipeline_mode<synchronous>, transform_indices = @transform_17, window_bounds = array<i64: 2, 1, 32>}, {pipeline_mode = #tpu.pipeline_mode<synchronous>, transform_indices = @transform_18, window_bounds = array<i64: 2, 1, 32>}, {pipeline_mode = #tpu.pipeline_mode<synchronous>, transform_indices = @transform_19, window_bounds = array<i64: 32, 32>}, {pipeline_mode = #tpu.pipeline_mode<synchronous>, transform_indices = @transform_20, window_bounds = array<i64: 1, 32>}, {pipeline_mode = #tpu.pipeline_mode<synchronous>, transform_indices = @transform_21, window_bounds = array<i64: 32, 8>}, {pipeline_mode = #tpu.pipeline_mode<synchronous>, transform_indices = @transform_22, window_bounds = array<i64: 1, 8>}, {transform_indices = @transform_23, window_bounds = array<i64: 1, 16, 32>}, {transform_indices = @transform_24, window_bounds = array<i64: 1, 16, 8>}]} {
    %c0 = arith.constant 0 : index
    %c0_0 = arith.constant 0 : index
    %c0_1 = arith.constant 0 : index
    %0 = vector.load %arg2[%c0, %c0_0, %c0_1] : memref<1x4x192xf32, #tpu.memory_space<vmem>>, vector<1x4x192xf32>
    %1 = vector.shape_cast %0 : vector<1x4x192xf32> to vector<4x192xf32>
    %c0_2 = arith.constant 0 : index
    %c0_3 = arith.constant 0 : index
    %2 = vector.load %arg3[%c0_2, %c0_3] : memref<192x32xf32, #tpu.memory_space<vmem>>, vector<192x32xf32>
    %cst = arith.constant dense<0.000000e+00> : vector<4x32xf32>
    %3 = tpu.matmul %1, %2, %cst {dimension_numbers = #tpu.dot_dimension_numbers<[1], [0], [0], [1], [0, 0, 1, 1], [], []>} : vector<4x192xf32>, vector<192x32xf32>, vector<4x32xf32> -> vector<4x32xf32>
    %c0_4 = arith.constant 0 : index
    %c0_5 = arith.constant 0 : index
    %4 = vector.load %arg4[%c0_4, %c0_5] : memref<1x32xf32, #tpu.memory_space<vmem>>, vector<1x32xf32>
    %5 = vector.broadcast %4 : vector<1x32xf32> to vector<4x32xf32>
    %6 = arith.addf %3, %5 : vector<4x32xf32>
    %c0_6 = arith.constant 0 : index
    %c0_7 = arith.constant 0 : index
    %7 = vector.load %arg5[%c0_6, %c0_7] : memref<4x32xf32, #tpu.memory_space<vmem>>, vector<4x32xf32>
    %8 = arith.addf %6, %7 : vector<4x32xf32>
    %cst_8 = arith.constant 0.000000e+00 : f32
    %9 = vector.broadcast %cst_8 : f32 to vector<4x32xf32>
    %c0_9 = arith.constant 0 : index
    %c0_10 = arith.constant 0 : index
    %c0_11 = arith.constant 0 : index
    %10 = vector.load %arg1[%c0_9, %c0_10, %c0_11] : memref<1x8x32xf32, #tpu.memory_space<vmem>>, vector<1x8x32xf32>
    %11 = vector.shape_cast %10 : vector<1x8x32xf32> to vector<8x32xf32>
    %12 = tpu.concatenate %11, %8, %9 in 0 : vector<8x32xf32>, vector<4x32xf32>, vector<4x32xf32> -> vector<16x32xf32>
    %c0_12 = arith.constant 0 : index
    %c0_13 = arith.constant 0 : index
    %13 = vector.load %arg6[%c0_12, %c0_13] : memref<1x32xf32, #tpu.memory_space<vmem>>, vector<1x32xf32>
    %c0_14 = arith.constant 0 : index
    %c0_15 = arith.constant 0 : index
    %14 = vector.load %arg7[%c0_14, %c0_15] : memref<1x32xf32, #tpu.memory_space<vmem>>, vector<1x32xf32>
    %cst_16 = arith.constant dense<0.000000e+00> : vector<16xf32>
    %15 = vector.multi_reduction <add>, %12, %cst_16 [1] : vector<16x32xf32> to vector<16xf32>
    %16 = vector.shape_cast %15 : vector<16xf32> to vector<16x1xf32>
    %cst_17 = arith.constant 3.200000e+01 : f32
    %17 = vector.broadcast %cst_17 : f32 to vector<16x1xf32>
    %18 = arith.divf %16, %17 : vector<16x1xf32>
    %19 = vector.broadcast %18 : vector<16x1xf32> to vector<16x32xf32>
    %20 = arith.subf %12, %19 : vector<16x32xf32>
    %21 = arith.mulf %20, %20 : vector<16x32xf32>
    %cst_18 = arith.constant dense<0.000000e+00> : vector<16xf32>
    %22 = vector.multi_reduction <add>, %21, %cst_18 [1] : vector<16x32xf32> to vector<16xf32>
    %23 = vector.shape_cast %22 : vector<16xf32> to vector<16x1xf32>
    %cst_19 = arith.constant 3.200000e+01 : f32
    %24 = vector.broadcast %cst_19 : f32 to vector<16x1xf32>
    %25 = arith.divf %23, %24 : vector<16x1xf32>
    %26 = vector.broadcast %18 : vector<16x1xf32> to vector<16x32xf32>
    %27 = arith.subf %12, %26 : vector<16x32xf32>
    %cst_20 = arith.constant 9.99999996E-13 : f32
    %28 = vector.broadcast %cst_20 : f32 to vector<16x1xf32>
    %29 = arith.addf %25, %28 : vector<16x1xf32>
    %30 = math.rsqrt %29 : vector<16x1xf32>
    %31 = vector.broadcast %30 : vector<16x1xf32> to vector<16x32xf32>
    %32 = arith.mulf %27, %31 : vector<16x32xf32>
    %33 = vector.broadcast %13 : vector<1x32xf32> to vector<16x32xf32>
    %34 = arith.mulf %32, %33 : vector<16x32xf32>
    %35 = vector.broadcast %14 : vector<1x32xf32> to vector<16x32xf32>
    %36 = arith.addf %34, %35 : vector<16x32xf32>
    %37 = tpu.iota {dimensions = array<i32: 1>} : vector<16x16xi32>
    %c12_i32 = arith.constant 12 : i32
    %38 = vector.broadcast %c12_i32 : i32 to vector<16x16xi32>
    %39 = arith.cmpi slt, %37, %38 : vector<16x16xi32>
    %cst_21 = arith.constant 0.000000e+00 : f32
    %cst_22 = arith.constant -1.000000e+09 : f32
    %40 = vector.broadcast %cst_21 : f32 to vector<16x16xf32>
    %41 = vector.broadcast %cst_22 : f32 to vector<16x16xf32>
    %42 = arith.select %39, %40, %41 : vector<16x16xi1>, vector<16x16xf32>
    %c0_23 = arith.constant 0 : index
    %c0_24 = arith.constant 0 : index
    %c0_25 = arith.constant 0 : index
    %43 = vector.load %arg8[%c0_23, %c0_24, %c0_25] : memref<2x32x96xf32, #tpu.memory_space<vmem>>, vector<1x32x96xf32>
    %44 = vector.shape_cast %43 : vector<1x32x96xf32> to vector<32x96xf32>
    %cst_26 = arith.constant dense<0.000000e+00> : vector<16x96xf32>
    %45 = tpu.matmul %36, %44, %cst_26 {dimension_numbers = #tpu.dot_dimension_numbers<[1], [0], [0], [1], [0, 0, 1, 1], [], []>} : vector<16x32xf32>, vector<32x96xf32>, vector<16x96xf32> -> vector<16x96xf32>
    %c0_27 = arith.constant 0 : index
    %c0_28 = arith.constant 0 : index
    %c0_29 = arith.constant 0 : index
    %46 = vector.load %arg9[%c0_27, %c0_28, %c0_29] : memref<2x1x96xf32, #tpu.memory_space<vmem>>, vector<1x1x96xf32>
    %47 = vector.shape_cast %46 : vector<1x1x96xf32> to vector<1x96xf32>
    %48 = vector.broadcast %47 : vector<1x96xf32> to vector<16x96xf32>
    %49 = arith.addf %45, %48 : vector<16x96xf32>
    %c0_30 = arith.constant 0 : index
    %c0_31 = arith.constant 0 : index
    %c0_32 = arith.constant 0 : index
    %50 = vector.load %arg10[%c0_30, %c0_31, %c0_32] : memref<2x32x32xf32, #tpu.memory_space<vmem>>, vector<1x32x32xf32>
    %51 = vector.shape_cast %50 : vector<1x32x32xf32> to vector<32x32xf32>
    %cst_33 = arith.constant 0.000000e+00 : f32
    %52 = vector.broadcast %cst_33 : f32 to vector<16x32xf32>
    %53 = vector.extract_strided_slice %49 {offsets = [0, 0], sizes = [16, 16], strides = [1, 1]} : vector<16x96xf32> to vector<16x16xf32>
    %cst_34 = arith.constant 2.500000e-01 : f32
    %54 = vector.broadcast %cst_34 : f32 to vector<16x16xf32>
    %55 = arith.mulf %53, %54 : vector<16x16xf32>
    %56 = vector.extract_strided_slice %49 {offsets = [0, 32], sizes = [16, 16], strides = [1, 1]} : vector<16x96xf32> to vector<16x16xf32>
    %57 = vector.extract_strided_slice %49 {offsets = [0, 64], sizes = [16, 16], strides = [1, 1]} : vector<16x96xf32> to vector<16x16xf32>
    %58 = tpu.transpose %56, [1, 0] : vector<16x16xf32> -> vector<16x16xf32>
    %cst_35 = arith.constant dense<0.000000e+00> : vector<16x16xf32>
    %59 = tpu.matmul %55, %58, %cst_35 {dimension_numbers = #tpu.dot_dimension_numbers<[1], [0], [0], [1], [0, 0, 1, 1], [], []>} : vector<16x16xf32>, vector<16x16xf32>, vector<16x16xf32> -> vector<16x16xf32>
    %60 = arith.addf %59, %42 : vector<16x16xf32>
    %cst_36 = arith.constant dense<0xFF800000> : vector<16xf32>
    %61 = vector.multi_reduction <maximumf>, %60, %cst_36 [1] : vector<16x16xf32> to vector<16xf32>
    %62 = vector.shape_cast %61 : vector<16xf32> to vector<16x1xf32>
    %63 = vector.broadcast %62 : vector<16x1xf32> to vector<16x16xf32>
    %64 = arith.subf %60, %63 : vector<16x16xf32>
    %65 = math.exp %64 : vector<16x16xf32>
    %cst_37 = arith.constant dense<0.000000e+00> : vector<16xf32>
    %66 = vector.multi_reduction <add>, %65, %cst_37 [1] : vector<16x16xf32> to vector<16xf32>
    %67 = vector.shape_cast %66 : vector<16xf32> to vector<16x1xf32>
    %68 = tpu.reciprocal %67 {approx = true} : vector<16x1xf32> -> vector<16x1xf32>
    %69 = vector.broadcast %68 : vector<16x1xf32> to vector<16x16xf32>
    %70 = arith.mulf %65, %69 : vector<16x16xf32>
    %cst_38 = arith.constant dense<0.000000e+00> : vector<16x16xf32>
    %71 = tpu.matmul %70, %57, %cst_38 {dimension_numbers = #tpu.dot_dimension_numbers<[1], [0], [0], [1], [0, 0, 1, 1], [], []>} : vector<16x16xf32>, vector<16x16xf32>, vector<16x16xf32> -> vector<16x16xf32>
    %72 = vector.extract_strided_slice %51 {offsets = [0, 0], sizes = [16, 32], strides = [1, 1]} : vector<32x32xf32> to vector<16x32xf32>
    %cst_39 = arith.constant dense<0.000000e+00> : vector<16x32xf32>
    %73 = tpu.matmul %71, %72, %cst_39 {dimension_numbers = #tpu.dot_dimension_numbers<[1], [0], [0], [1], [0, 0, 1, 1], [], []>} : vector<16x16xf32>, vector<16x32xf32>, vector<16x32xf32> -> vector<16x32xf32>
    %74 = arith.addf %52, %73 : vector<16x32xf32>
    %75 = vector.extract_strided_slice %49 {offsets = [0, 16], sizes = [16, 16], strides = [1, 1]} : vector<16x96xf32> to vector<16x16xf32>
    %cst_40 = arith.constant 2.500000e-01 : f32
    %76 = vector.broadcast %cst_40 : f32 to vector<16x16xf32>
    %77 = arith.mulf %75, %76 : vector<16x16xf32>
    %78 = vector.extract_strided_slice %49 {offsets = [0, 48], sizes = [16, 16], strides = [1, 1]} : vector<16x96xf32> to vector<16x16xf32>
    %79 = vector.extract_strided_slice %49 {offsets = [0, 80], sizes = [16, 16], strides = [1, 1]} : vector<16x96xf32> to vector<16x16xf32>
    %80 = tpu.transpose %78, [1, 0] : vector<16x16xf32> -> vector<16x16xf32>
    %cst_41 = arith.constant dense<0.000000e+00> : vector<16x16xf32>
    %81 = tpu.matmul %77, %80, %cst_41 {dimension_numbers = #tpu.dot_dimension_numbers<[1], [0], [0], [1], [0, 0, 1, 1], [], []>} : vector<16x16xf32>, vector<16x16xf32>, vector<16x16xf32> -> vector<16x16xf32>
    %82 = arith.addf %81, %42 : vector<16x16xf32>
    %cst_42 = arith.constant dense<0xFF800000> : vector<16xf32>
    %83 = vector.multi_reduction <maximumf>, %82, %cst_42 [1] : vector<16x16xf32> to vector<16xf32>
    %84 = vector.shape_cast %83 : vector<16xf32> to vector<16x1xf32>
    %85 = vector.broadcast %84 : vector<16x1xf32> to vector<16x16xf32>
    %86 = arith.subf %82, %85 : vector<16x16xf32>
    %87 = math.exp %86 : vector<16x16xf32>
    %cst_43 = arith.constant dense<0.000000e+00> : vector<16xf32>
    %88 = vector.multi_reduction <add>, %87, %cst_43 [1] : vector<16x16xf32> to vector<16xf32>
    %89 = vector.shape_cast %88 : vector<16xf32> to vector<16x1xf32>
    %90 = tpu.reciprocal %89 {approx = true} : vector<16x1xf32> -> vector<16x1xf32>
    %91 = vector.broadcast %90 : vector<16x1xf32> to vector<16x16xf32>
    %92 = arith.mulf %87, %91 : vector<16x16xf32>
    %cst_44 = arith.constant dense<0.000000e+00> : vector<16x16xf32>
    %93 = tpu.matmul %92, %79, %cst_44 {dimension_numbers = #tpu.dot_dimension_numbers<[1], [0], [0], [1], [0, 0, 1, 1], [], []>} : vector<16x16xf32>, vector<16x16xf32>, vector<16x16xf32> -> vector<16x16xf32>
    %94 = vector.extract_strided_slice %51 {offsets = [16, 0], sizes = [16, 32], strides = [1, 1]} : vector<32x32xf32> to vector<16x32xf32>
    %cst_45 = arith.constant dense<0.000000e+00> : vector<16x32xf32>
    %95 = tpu.matmul %93, %94, %cst_45 {dimension_numbers = #tpu.dot_dimension_numbers<[1], [0], [0], [1], [0, 0, 1, 1], [], []>} : vector<16x16xf32>, vector<16x32xf32>, vector<16x32xf32> -> vector<16x32xf32>
    %96 = arith.addf %74, %95 : vector<16x32xf32>
    %c0_46 = arith.constant 0 : index
    %c0_47 = arith.constant 0 : index
    %c0_48 = arith.constant 0 : index
    %97 = vector.load %arg11[%c0_46, %c0_47, %c0_48] : memref<2x1x32xf32, #tpu.memory_space<vmem>>, vector<1x1x32xf32>
    %98 = vector.shape_cast %97 : vector<1x1x32xf32> to vector<1x32xf32>
    %99 = vector.broadcast %98 : vector<1x32xf32> to vector<16x32xf32>
    %100 = arith.addf %96, %99 : vector<16x32xf32>
    %101 = arith.addf %36, %100 : vector<16x32xf32>
    %c0_49 = arith.constant 0 : index
    %c0_50 = arith.constant 0 : index
    %c0_51 = arith.constant 0 : index
    %102 = vector.load %arg12[%c0_49, %c0_50, %c0_51] : memref<2x1x32xf32, #tpu.memory_space<vmem>>, vector<1x1x32xf32>
    %103 = vector.shape_cast %102 : vector<1x1x32xf32> to vector<1x32xf32>
    %c0_52 = arith.constant 0 : index
    %c0_53 = arith.constant 0 : index
    %c0_54 = arith.constant 0 : index
    %104 = vector.load %arg13[%c0_52, %c0_53, %c0_54] : memref<2x1x32xf32, #tpu.memory_space<vmem>>, vector<1x1x32xf32>
    %105 = vector.shape_cast %104 : vector<1x1x32xf32> to vector<1x32xf32>
    %cst_55 = arith.constant dense<0.000000e+00> : vector<16xf32>
    %106 = vector.multi_reduction <add>, %101, %cst_55 [1] : vector<16x32xf32> to vector<16xf32>
    %107 = vector.shape_cast %106 : vector<16xf32> to vector<16x1xf32>
    %cst_56 = arith.constant 3.200000e+01 : f32
    %108 = vector.broadcast %cst_56 : f32 to vector<16x1xf32>
    %109 = arith.divf %107, %108 : vector<16x1xf32>
    %110 = vector.broadcast %109 : vector<16x1xf32> to vector<16x32xf32>
    %111 = arith.subf %101, %110 : vector<16x32xf32>
    %112 = arith.mulf %111, %111 : vector<16x32xf32>
    %cst_57 = arith.constant dense<0.000000e+00> : vector<16xf32>
    %113 = vector.multi_reduction <add>, %112, %cst_57 [1] : vector<16x32xf32> to vector<16xf32>
    %114 = vector.shape_cast %113 : vector<16xf32> to vector<16x1xf32>
    %cst_58 = arith.constant 3.200000e+01 : f32
    %115 = vector.broadcast %cst_58 : f32 to vector<16x1xf32>
    %116 = arith.divf %114, %115 : vector<16x1xf32>
    %117 = vector.broadcast %109 : vector<16x1xf32> to vector<16x32xf32>
    %118 = arith.subf %101, %117 : vector<16x32xf32>
    %cst_59 = arith.constant 9.99999996E-13 : f32
    %119 = vector.broadcast %cst_59 : f32 to vector<16x1xf32>
    %120 = arith.addf %116, %119 : vector<16x1xf32>
    %121 = math.rsqrt %120 : vector<16x1xf32>
    %122 = vector.broadcast %121 : vector<16x1xf32> to vector<16x32xf32>
    %123 = arith.mulf %118, %122 : vector<16x32xf32>
    %124 = vector.broadcast %103 : vector<1x32xf32> to vector<16x32xf32>
    %125 = arith.mulf %123, %124 : vector<16x32xf32>
    %126 = vector.broadcast %105 : vector<1x32xf32> to vector<16x32xf32>
    %127 = arith.addf %125, %126 : vector<16x32xf32>
    %c0_60 = arith.constant 0 : index
    %c0_61 = arith.constant 0 : index
    %c0_62 = arith.constant 0 : index
    %128 = vector.load %arg14[%c0_60, %c0_61, %c0_62] : memref<2x32x128xf32, #tpu.memory_space<vmem>>, vector<1x32x128xf32>
    %129 = vector.shape_cast %128 : vector<1x32x128xf32> to vector<32x128xf32>
    %cst_63 = arith.constant dense<0.000000e+00> : vector<16x128xf32>
    %130 = tpu.matmul %127, %129, %cst_63 {dimension_numbers = #tpu.dot_dimension_numbers<[1], [0], [0], [1], [0, 0, 1, 1], [], []>} : vector<16x32xf32>, vector<32x128xf32>, vector<16x128xf32> -> vector<16x128xf32>
    %c0_64 = arith.constant 0 : index
    %c0_65 = arith.constant 0 : index
    %c0_66 = arith.constant 0 : index
    %131 = vector.load %arg15[%c0_64, %c0_65, %c0_66] : memref<2x1x128xf32, #tpu.memory_space<vmem>>, vector<1x1x128xf32>
    %132 = vector.shape_cast %131 : vector<1x1x128xf32> to vector<1x128xf32>
    %133 = vector.broadcast %132 : vector<1x128xf32> to vector<16x128xf32>
    %134 = arith.addf %130, %133 : vector<16x128xf32>
    %135 = arith.mulf %134, %134 : vector<16x128xf32>
    %136 = arith.mulf %134, %135 : vector<16x128xf32>
    %cst_67 = arith.constant 4.471500e-02 : f32
    %137 = vector.broadcast %cst_67 : f32 to vector<16x128xf32>
    %138 = arith.mulf %137, %136 : vector<16x128xf32>
    %139 = arith.addf %134, %138 : vector<16x128xf32>
    %cst_68 = arith.constant 0.797884583 : f32
    %140 = vector.broadcast %cst_68 : f32 to vector<16x128xf32>
    %141 = arith.mulf %140, %139 : vector<16x128xf32>
    %142 = math.tanh %141 : vector<16x128xf32>
    %cst_69 = arith.constant 1.000000e+00 : f32
    %143 = vector.broadcast %cst_69 : f32 to vector<16x128xf32>
    %144 = arith.addf %143, %142 : vector<16x128xf32>
    %cst_70 = arith.constant 5.000000e-01 : f32
    %145 = vector.broadcast %cst_70 : f32 to vector<16x128xf32>
    %146 = arith.mulf %145, %144 : vector<16x128xf32>
    %147 = arith.mulf %134, %146 : vector<16x128xf32>
    %c0_71 = arith.constant 0 : index
    %c0_72 = arith.constant 0 : index
    %c0_73 = arith.constant 0 : index
    %148 = vector.load %arg16[%c0_71, %c0_72, %c0_73] : memref<2x128x32xf32, #tpu.memory_space<vmem>>, vector<1x128x32xf32>
    %149 = vector.shape_cast %148 : vector<1x128x32xf32> to vector<128x32xf32>
    %cst_74 = arith.constant dense<0.000000e+00> : vector<16x32xf32>
    %150 = tpu.matmul %147, %149, %cst_74 {dimension_numbers = #tpu.dot_dimension_numbers<[1], [0], [0], [1], [0, 0, 1, 1], [], []>} : vector<16x128xf32>, vector<128x32xf32>, vector<16x32xf32> -> vector<16x32xf32>
    %c0_75 = arith.constant 0 : index
    %c0_76 = arith.constant 0 : index
    %c0_77 = arith.constant 0 : index
    %151 = vector.load %arg17[%c0_75, %c0_76, %c0_77] : memref<2x1x32xf32, #tpu.memory_space<vmem>>, vector<1x1x32xf32>
    %152 = vector.shape_cast %151 : vector<1x1x32xf32> to vector<1x32xf32>
    %153 = vector.broadcast %152 : vector<1x32xf32> to vector<16x32xf32>
    %154 = arith.addf %150, %153 : vector<16x32xf32>
    %155 = arith.addf %127, %154 : vector<16x32xf32>
    %c0_78 = arith.constant 0 : index
    %c0_79 = arith.constant 0 : index
    %c0_80 = arith.constant 0 : index
    %156 = vector.load %arg18[%c0_78, %c0_79, %c0_80] : memref<2x1x32xf32, #tpu.memory_space<vmem>>, vector<1x1x32xf32>
    %157 = vector.shape_cast %156 : vector<1x1x32xf32> to vector<1x32xf32>
    %c0_81 = arith.constant 0 : index
    %c0_82 = arith.constant 0 : index
    %c0_83 = arith.constant 0 : index
    %158 = vector.load %arg19[%c0_81, %c0_82, %c0_83] : memref<2x1x32xf32, #tpu.memory_space<vmem>>, vector<1x1x32xf32>
    %159 = vector.shape_cast %158 : vector<1x1x32xf32> to vector<1x32xf32>
    %cst_84 = arith.constant dense<0.000000e+00> : vector<16xf32>
    %160 = vector.multi_reduction <add>, %155, %cst_84 [1] : vector<16x32xf32> to vector<16xf32>
    %161 = vector.shape_cast %160 : vector<16xf32> to vector<16x1xf32>
    %cst_85 = arith.constant 3.200000e+01 : f32
    %162 = vector.broadcast %cst_85 : f32 to vector<16x1xf32>
    %163 = arith.divf %161, %162 : vector<16x1xf32>
    %164 = vector.broadcast %163 : vector<16x1xf32> to vector<16x32xf32>
    %165 = arith.subf %155, %164 : vector<16x32xf32>
    %166 = arith.mulf %165, %165 : vector<16x32xf32>
    %cst_86 = arith.constant dense<0.000000e+00> : vector<16xf32>
    %167 = vector.multi_reduction <add>, %166, %cst_86 [1] : vector<16x32xf32> to vector<16xf32>
    %168 = vector.shape_cast %167 : vector<16xf32> to vector<16x1xf32>
    %cst_87 = arith.constant 3.200000e+01 : f32
    %169 = vector.broadcast %cst_87 : f32 to vector<16x1xf32>
    %170 = arith.divf %168, %169 : vector<16x1xf32>
    %171 = vector.broadcast %163 : vector<16x1xf32> to vector<16x32xf32>
    %172 = arith.subf %155, %171 : vector<16x32xf32>
    %cst_88 = arith.constant 9.99999996E-13 : f32
    %173 = vector.broadcast %cst_88 : f32 to vector<16x1xf32>
    %174 = arith.addf %170, %173 : vector<16x1xf32>
    %175 = math.rsqrt %174 : vector<16x1xf32>
    %176 = vector.broadcast %175 : vector<16x1xf32> to vector<16x32xf32>
    %177 = arith.mulf %172, %176 : vector<16x32xf32>
    %178 = vector.broadcast %157 : vector<1x32xf32> to vector<16x32xf32>
    %179 = arith.mulf %177, %178 : vector<16x32xf32>
    %180 = vector.broadcast %159 : vector<1x32xf32> to vector<16x32xf32>
    %181 = arith.addf %179, %180 : vector<16x32xf32>
    %c1 = arith.constant 1 : index
    %c0_89 = arith.constant 0 : index
    %c0_90 = arith.constant 0 : index
    %182 = vector.load %arg8[%c1, %c0_89, %c0_90] : memref<2x32x96xf32, #tpu.memory_space<vmem>>, vector<1x32x96xf32>
    %183 = vector.shape_cast %182 : vector<1x32x96xf32> to vector<32x96xf32>
    %cst_91 = arith.constant dense<0.000000e+00> : vector<16x96xf32>
    %184 = tpu.matmul %181, %183, %cst_91 {dimension_numbers = #tpu.dot_dimension_numbers<[1], [0], [0], [1], [0, 0, 1, 1], [], []>} : vector<16x32xf32>, vector<32x96xf32>, vector<16x96xf32> -> vector<16x96xf32>
    %c1_92 = arith.constant 1 : index
    %c0_93 = arith.constant 0 : index
    %c0_94 = arith.constant 0 : index
    %185 = vector.load %arg9[%c1_92, %c0_93, %c0_94] : memref<2x1x96xf32, #tpu.memory_space<vmem>>, vector<1x1x96xf32>
    %186 = vector.shape_cast %185 : vector<1x1x96xf32> to vector<1x96xf32>
    %187 = vector.broadcast %186 : vector<1x96xf32> to vector<16x96xf32>
    %188 = arith.addf %184, %187 : vector<16x96xf32>
    %c1_95 = arith.constant 1 : index
    %c0_96 = arith.constant 0 : index
    %c0_97 = arith.constant 0 : index
    %189 = vector.load %arg10[%c1_95, %c0_96, %c0_97] : memref<2x32x32xf32, #tpu.memory_space<vmem>>, vector<1x32x32xf32>
    %190 = vector.shape_cast %189 : vector<1x32x32xf32> to vector<32x32xf32>
    %cst_98 = arith.constant 0.000000e+00 : f32
    %191 = vector.broadcast %cst_98 : f32 to vector<16x32xf32>
    %192 = vector.extract_strided_slice %188 {offsets = [0, 0], sizes = [16, 16], strides = [1, 1]} : vector<16x96xf32> to vector<16x16xf32>
    %cst_99 = arith.constant 2.500000e-01 : f32
    %193 = vector.broadcast %cst_99 : f32 to vector<16x16xf32>
    %194 = arith.mulf %192, %193 : vector<16x16xf32>
    %195 = vector.extract_strided_slice %188 {offsets = [0, 32], sizes = [16, 16], strides = [1, 1]} : vector<16x96xf32> to vector<16x16xf32>
    %196 = vector.extract_strided_slice %188 {offsets = [0, 64], sizes = [16, 16], strides = [1, 1]} : vector<16x96xf32> to vector<16x16xf32>
    %197 = tpu.transpose %195, [1, 0] : vector<16x16xf32> -> vector<16x16xf32>
    %cst_100 = arith.constant dense<0.000000e+00> : vector<16x16xf32>
    %198 = tpu.matmul %194, %197, %cst_100 {dimension_numbers = #tpu.dot_dimension_numbers<[1], [0], [0], [1], [0, 0, 1, 1], [], []>} : vector<16x16xf32>, vector<16x16xf32>, vector<16x16xf32> -> vector<16x16xf32>
    %199 = arith.addf %198, %42 : vector<16x16xf32>
    %cst_101 = arith.constant dense<0xFF800000> : vector<16xf32>
    %200 = vector.multi_reduction <maximumf>, %199, %cst_101 [1] : vector<16x16xf32> to vector<16xf32>
    %201 = vector.shape_cast %200 : vector<16xf32> to vector<16x1xf32>
    %202 = vector.broadcast %201 : vector<16x1xf32> to vector<16x16xf32>
    %203 = arith.subf %199, %202 : vector<16x16xf32>
    %204 = math.exp %203 : vector<16x16xf32>
    %cst_102 = arith.constant dense<0.000000e+00> : vector<16xf32>
    %205 = vector.multi_reduction <add>, %204, %cst_102 [1] : vector<16x16xf32> to vector<16xf32>
    %206 = vector.shape_cast %205 : vector<16xf32> to vector<16x1xf32>
    %207 = tpu.reciprocal %206 {approx = true} : vector<16x1xf32> -> vector<16x1xf32>
    %208 = vector.broadcast %207 : vector<16x1xf32> to vector<16x16xf32>
    %209 = arith.mulf %204, %208 : vector<16x16xf32>
    %cst_103 = arith.constant dense<0.000000e+00> : vector<16x16xf32>
    %210 = tpu.matmul %209, %196, %cst_103 {dimension_numbers = #tpu.dot_dimension_numbers<[1], [0], [0], [1], [0, 0, 1, 1], [], []>} : vector<16x16xf32>, vector<16x16xf32>, vector<16x16xf32> -> vector<16x16xf32>
    %211 = vector.extract_strided_slice %190 {offsets = [0, 0], sizes = [16, 32], strides = [1, 1]} : vector<32x32xf32> to vector<16x32xf32>
    %cst_104 = arith.constant dense<0.000000e+00> : vector<16x32xf32>
    %212 = tpu.matmul %210, %211, %cst_104 {dimension_numbers = #tpu.dot_dimension_numbers<[1], [0], [0], [1], [0, 0, 1, 1], [], []>} : vector<16x16xf32>, vector<16x32xf32>, vector<16x32xf32> -> vector<16x32xf32>
    %213 = arith.addf %191, %212 : vector<16x32xf32>
    %214 = vector.extract_strided_slice %188 {offsets = [0, 16], sizes = [16, 16], strides = [1, 1]} : vector<16x96xf32> to vector<16x16xf32>
    %cst_105 = arith.constant 2.500000e-01 : f32
    %215 = vector.broadcast %cst_105 : f32 to vector<16x16xf32>
    %216 = arith.mulf %214, %215 : vector<16x16xf32>
    %217 = vector.extract_strided_slice %188 {offsets = [0, 48], sizes = [16, 16], strides = [1, 1]} : vector<16x96xf32> to vector<16x16xf32>
    %218 = vector.extract_strided_slice %188 {offsets = [0, 80], sizes = [16, 16], strides = [1, 1]} : vector<16x96xf32> to vector<16x16xf32>
    %219 = tpu.transpose %217, [1, 0] : vector<16x16xf32> -> vector<16x16xf32>
    %cst_106 = arith.constant dense<0.000000e+00> : vector<16x16xf32>
    %220 = tpu.matmul %216, %219, %cst_106 {dimension_numbers = #tpu.dot_dimension_numbers<[1], [0], [0], [1], [0, 0, 1, 1], [], []>} : vector<16x16xf32>, vector<16x16xf32>, vector<16x16xf32> -> vector<16x16xf32>
    %221 = arith.addf %220, %42 : vector<16x16xf32>
    %cst_107 = arith.constant dense<0xFF800000> : vector<16xf32>
    %222 = vector.multi_reduction <maximumf>, %221, %cst_107 [1] : vector<16x16xf32> to vector<16xf32>
    %223 = vector.shape_cast %222 : vector<16xf32> to vector<16x1xf32>
    %224 = vector.broadcast %223 : vector<16x1xf32> to vector<16x16xf32>
    %225 = arith.subf %221, %224 : vector<16x16xf32>
    %226 = math.exp %225 : vector<16x16xf32>
    %cst_108 = arith.constant dense<0.000000e+00> : vector<16xf32>
    %227 = vector.multi_reduction <add>, %226, %cst_108 [1] : vector<16x16xf32> to vector<16xf32>
    %228 = vector.shape_cast %227 : vector<16xf32> to vector<16x1xf32>
    %229 = tpu.reciprocal %228 {approx = true} : vector<16x1xf32> -> vector<16x1xf32>
    %230 = vector.broadcast %229 : vector<16x1xf32> to vector<16x16xf32>
    %231 = arith.mulf %226, %230 : vector<16x16xf32>
    %cst_109 = arith.constant dense<0.000000e+00> : vector<16x16xf32>
    %232 = tpu.matmul %231, %218, %cst_109 {dimension_numbers = #tpu.dot_dimension_numbers<[1], [0], [0], [1], [0, 0, 1, 1], [], []>} : vector<16x16xf32>, vector<16x16xf32>, vector<16x16xf32> -> vector<16x16xf32>
    %233 = vector.extract_strided_slice %190 {offsets = [16, 0], sizes = [16, 32], strides = [1, 1]} : vector<32x32xf32> to vector<16x32xf32>
    %cst_110 = arith.constant dense<0.000000e+00> : vector<16x32xf32>
    %234 = tpu.matmul %232, %233, %cst_110 {dimension_numbers = #tpu.dot_dimension_numbers<[1], [0], [0], [1], [0, 0, 1, 1], [], []>} : vector<16x16xf32>, vector<16x32xf32>, vector<16x32xf32> -> vector<16x32xf32>
    %235 = arith.addf %213, %234 : vector<16x32xf32>
    %c1_111 = arith.constant 1 : index
    %c0_112 = arith.constant 0 : index
    %c0_113 = arith.constant 0 : index
    %236 = vector.load %arg11[%c1_111, %c0_112, %c0_113] : memref<2x1x32xf32, #tpu.memory_space<vmem>>, vector<1x1x32xf32>
    %237 = vector.shape_cast %236 : vector<1x1x32xf32> to vector<1x32xf32>
    %238 = vector.broadcast %237 : vector<1x32xf32> to vector<16x32xf32>
    %239 = arith.addf %235, %238 : vector<16x32xf32>
    %240 = arith.addf %181, %239 : vector<16x32xf32>
    %c1_114 = arith.constant 1 : index
    %c0_115 = arith.constant 0 : index
    %c0_116 = arith.constant 0 : index
    %241 = vector.load %arg12[%c1_114, %c0_115, %c0_116] : memref<2x1x32xf32, #tpu.memory_space<vmem>>, vector<1x1x32xf32>
    %242 = vector.shape_cast %241 : vector<1x1x32xf32> to vector<1x32xf32>
    %c1_117 = arith.constant 1 : index
    %c0_118 = arith.constant 0 : index
    %c0_119 = arith.constant 0 : index
    %243 = vector.load %arg13[%c1_117, %c0_118, %c0_119] : memref<2x1x32xf32, #tpu.memory_space<vmem>>, vector<1x1x32xf32>
    %244 = vector.shape_cast %243 : vector<1x1x32xf32> to vector<1x32xf32>
    %cst_120 = arith.constant dense<0.000000e+00> : vector<16xf32>
    %245 = vector.multi_reduction <add>, %240, %cst_120 [1] : vector<16x32xf32> to vector<16xf32>
    %246 = vector.shape_cast %245 : vector<16xf32> to vector<16x1xf32>
    %cst_121 = arith.constant 3.200000e+01 : f32
    %247 = vector.broadcast %cst_121 : f32 to vector<16x1xf32>
    %248 = arith.divf %246, %247 : vector<16x1xf32>
    %249 = vector.broadcast %248 : vector<16x1xf32> to vector<16x32xf32>
    %250 = arith.subf %240, %249 : vector<16x32xf32>
    %251 = arith.mulf %250, %250 : vector<16x32xf32>
    %cst_122 = arith.constant dense<0.000000e+00> : vector<16xf32>
    %252 = vector.multi_reduction <add>, %251, %cst_122 [1] : vector<16x32xf32> to vector<16xf32>
    %253 = vector.shape_cast %252 : vector<16xf32> to vector<16x1xf32>
    %cst_123 = arith.constant 3.200000e+01 : f32
    %254 = vector.broadcast %cst_123 : f32 to vector<16x1xf32>
    %255 = arith.divf %253, %254 : vector<16x1xf32>
    %256 = vector.broadcast %248 : vector<16x1xf32> to vector<16x32xf32>
    %257 = arith.subf %240, %256 : vector<16x32xf32>
    %cst_124 = arith.constant 9.99999996E-13 : f32
    %258 = vector.broadcast %cst_124 : f32 to vector<16x1xf32>
    %259 = arith.addf %255, %258 : vector<16x1xf32>
    %260 = math.rsqrt %259 : vector<16x1xf32>
    %261 = vector.broadcast %260 : vector<16x1xf32> to vector<16x32xf32>
    %262 = arith.mulf %257, %261 : vector<16x32xf32>
    %263 = vector.broadcast %242 : vector<1x32xf32> to vector<16x32xf32>
    %264 = arith.mulf %262, %263 : vector<16x32xf32>
    %265 = vector.broadcast %244 : vector<1x32xf32> to vector<16x32xf32>
    %266 = arith.addf %264, %265 : vector<16x32xf32>
    %c1_125 = arith.constant 1 : index
    %c0_126 = arith.constant 0 : index
    %c0_127 = arith.constant 0 : index
    %267 = vector.load %arg14[%c1_125, %c0_126, %c0_127] : memref<2x32x128xf32, #tpu.memory_space<vmem>>, vector<1x32x128xf32>
    %268 = vector.shape_cast %267 : vector<1x32x128xf32> to vector<32x128xf32>
    %cst_128 = arith.constant dense<0.000000e+00> : vector<16x128xf32>
    %269 = tpu.matmul %266, %268, %cst_128 {dimension_numbers = #tpu.dot_dimension_numbers<[1], [0], [0], [1], [0, 0, 1, 1], [], []>} : vector<16x32xf32>, vector<32x128xf32>, vector<16x128xf32> -> vector<16x128xf32>
    %c1_129 = arith.constant 1 : index
    %c0_130 = arith.constant 0 : index
    %c0_131 = arith.constant 0 : index
    %270 = vector.load %arg15[%c1_129, %c0_130, %c0_131] : memref<2x1x128xf32, #tpu.memory_space<vmem>>, vector<1x1x128xf32>
    %271 = vector.shape_cast %270 : vector<1x1x128xf32> to vector<1x128xf32>
    %272 = vector.broadcast %271 : vector<1x128xf32> to vector<16x128xf32>
    %273 = arith.addf %269, %272 : vector<16x128xf32>
    %274 = arith.mulf %273, %273 : vector<16x128xf32>
    %275 = arith.mulf %273, %274 : vector<16x128xf32>
    %cst_132 = arith.constant 4.471500e-02 : f32
    %276 = vector.broadcast %cst_132 : f32 to vector<16x128xf32>
    %277 = arith.mulf %276, %275 : vector<16x128xf32>
    %278 = arith.addf %273, %277 : vector<16x128xf32>
    %cst_133 = arith.constant 0.797884583 : f32
    %279 = vector.broadcast %cst_133 : f32 to vector<16x128xf32>
    %280 = arith.mulf %279, %278 : vector<16x128xf32>
    %281 = math.tanh %280 : vector<16x128xf32>
    %cst_134 = arith.constant 1.000000e+00 : f32
    %282 = vector.broadcast %cst_134 : f32 to vector<16x128xf32>
    %283 = arith.addf %282, %281 : vector<16x128xf32>
    %cst_135 = arith.constant 5.000000e-01 : f32
    %284 = vector.broadcast %cst_135 : f32 to vector<16x128xf32>
    %285 = arith.mulf %284, %283 : vector<16x128xf32>
    %286 = arith.mulf %273, %285 : vector<16x128xf32>
    %c1_136 = arith.constant 1 : index
    %c0_137 = arith.constant 0 : index
    %c0_138 = arith.constant 0 : index
    %287 = vector.load %arg16[%c1_136, %c0_137, %c0_138] : memref<2x128x32xf32, #tpu.memory_space<vmem>>, vector<1x128x32xf32>
    %288 = vector.shape_cast %287 : vector<1x128x32xf32> to vector<128x32xf32>
    %cst_139 = arith.constant dense<0.000000e+00> : vector<16x32xf32>
    %289 = tpu.matmul %286, %288, %cst_139 {dimension_numbers = #tpu.dot_dimension_numbers<[1], [0], [0], [1], [0, 0, 1, 1], [], []>} : vector<16x128xf32>, vector<128x32xf32>, vector<16x32xf32> -> vector<16x32xf32>
    %c1_140 = arith.constant 1 : index
    %c0_141 = arith.constant 0 : index
    %c0_142 = arith.constant 0 : index
    %290 = vector.load %arg17[%c1_140, %c0_141, %c0_142] : memref<2x1x32xf32, #tpu.memory_space<vmem>>, vector<1x1x32xf32>
    %291 = vector.shape_cast %290 : vector<1x1x32xf32> to vector<1x32xf32>
    %292 = vector.broadcast %291 : vector<1x32xf32> to vector<16x32xf32>
    %293 = arith.addf %289, %292 : vector<16x32xf32>
    %294 = arith.addf %266, %293 : vector<16x32xf32>
    %c1_143 = arith.constant 1 : index
    %c0_144 = arith.constant 0 : index
    %c0_145 = arith.constant 0 : index
    %295 = vector.load %arg18[%c1_143, %c0_144, %c0_145] : memref<2x1x32xf32, #tpu.memory_space<vmem>>, vector<1x1x32xf32>
    %296 = vector.shape_cast %295 : vector<1x1x32xf32> to vector<1x32xf32>
    %c1_146 = arith.constant 1 : index
    %c0_147 = arith.constant 0 : index
    %c0_148 = arith.constant 0 : index
    %297 = vector.load %arg19[%c1_146, %c0_147, %c0_148] : memref<2x1x32xf32, #tpu.memory_space<vmem>>, vector<1x1x32xf32>
    %298 = vector.shape_cast %297 : vector<1x1x32xf32> to vector<1x32xf32>
    %cst_149 = arith.constant dense<0.000000e+00> : vector<16xf32>
    %299 = vector.multi_reduction <add>, %294, %cst_149 [1] : vector<16x32xf32> to vector<16xf32>
    %300 = vector.shape_cast %299 : vector<16xf32> to vector<16x1xf32>
    %cst_150 = arith.constant 3.200000e+01 : f32
    %301 = vector.broadcast %cst_150 : f32 to vector<16x1xf32>
    %302 = arith.divf %300, %301 : vector<16x1xf32>
    %303 = vector.broadcast %302 : vector<16x1xf32> to vector<16x32xf32>
    %304 = arith.subf %294, %303 : vector<16x32xf32>
    %305 = arith.mulf %304, %304 : vector<16x32xf32>
    %cst_151 = arith.constant dense<0.000000e+00> : vector<16xf32>
    %306 = vector.multi_reduction <add>, %305, %cst_151 [1] : vector<16x32xf32> to vector<16xf32>
    %307 = vector.shape_cast %306 : vector<16xf32> to vector<16x1xf32>
    %cst_152 = arith.constant 3.200000e+01 : f32
    %308 = vector.broadcast %cst_152 : f32 to vector<16x1xf32>
    %309 = arith.divf %307, %308 : vector<16x1xf32>
    %310 = vector.broadcast %302 : vector<16x1xf32> to vector<16x32xf32>
    %311 = arith.subf %294, %310 : vector<16x32xf32>
    %cst_153 = arith.constant 9.99999996E-13 : f32
    %312 = vector.broadcast %cst_153 : f32 to vector<16x1xf32>
    %313 = arith.addf %309, %312 : vector<16x1xf32>
    %314 = math.rsqrt %313 : vector<16x1xf32>
    %315 = vector.broadcast %314 : vector<16x1xf32> to vector<16x32xf32>
    %316 = arith.mulf %311, %315 : vector<16x32xf32>
    %317 = vector.broadcast %296 : vector<1x32xf32> to vector<16x32xf32>
    %318 = arith.mulf %316, %317 : vector<16x32xf32>
    %319 = vector.broadcast %298 : vector<1x32xf32> to vector<16x32xf32>
    %320 = arith.addf %318, %319 : vector<16x32xf32>
    %c0_154 = arith.constant 0 : index
    %c0_155 = arith.constant 0 : index
    %c0_156 = arith.constant 0 : index
    %321 = vector.load %arg24[%c0_154, %c0_155, %c0_156] : memref<1x16x32xf32, #tpu.memory_space<vmem>>, vector<1x16x32xf32>
    %322 = vector.shape_cast %321 : vector<1x16x32xf32> to vector<16x32xf32>
    %323 = vector.shape_cast %320 : vector<16x32xf32> to vector<1x16x32xf32>
    tpu.vector_store %arg24[%c0_154, %c0_155, %c0_156], %323 {strides = array<i32>} : memref<1x16x32xf32, #tpu.memory_space<vmem>>, vector<1x16x32xf32>,
    %c0_157 = arith.constant 0 : index
    %c0_158 = arith.constant 0 : index
    %324 = vector.load %arg20[%c0_157, %c0_158] : memref<32x32xf32, #tpu.memory_space<vmem>>, vector<32x32xf32>
    %cst_159 = arith.constant dense<0.000000e+00> : vector<16x32xf32>
    %325 = tpu.matmul %320, %324, %cst_159 {dimension_numbers = #tpu.dot_dimension_numbers<[1], [0], [0], [1], [0, 0, 1, 1], [], []>} : vector<16x32xf32>, vector<32x32xf32>, vector<16x32xf32> -> vector<16x32xf32>
    %c0_160 = arith.constant 0 : index
    %c0_161 = arith.constant 0 : index
    %326 = vector.load %arg21[%c0_160, %c0_161] : memref<1x32xf32, #tpu.memory_space<vmem>>, vector<1x32xf32>
    %327 = vector.broadcast %326 : vector<1x32xf32> to vector<16x32xf32>
    %328 = arith.addf %325, %327 : vector<16x32xf32>
    %cst_162 = arith.constant 0.000000e+00 : f32
    %329 = vector.broadcast %cst_162 : f32 to vector<16x32xf32>
    %330 = arith.maximumf %328, %329 : vector<16x32xf32>
    %c0_163 = arith.constant 0 : index
    %c0_164 = arith.constant 0 : index
    %331 = vector.load %arg22[%c0_163, %c0_164] : memref<32x8xf32, #tpu.memory_space<vmem>>, vector<32x8xf32>
    %cst_165 = arith.constant dense<0.000000e+00> : vector<16x8xf32>
    %332 = tpu.matmul %330, %331, %cst_165 {dimension_numbers = #tpu.dot_dimension_numbers<[1], [0], [0], [1], [0, 0, 1, 1], [], []>} : vector<16x32xf32>, vector<32x8xf32>, vector<16x8xf32> -> vector<16x8xf32>
    %c0_166 = arith.constant 0 : index
    %c0_167 = arith.constant 0 : index
    %333 = vector.load %arg23[%c0_166, %c0_167] : memref<1x8xf32, #tpu.memory_space<vmem>>, vector<1x8xf32>
    %334 = vector.broadcast %333 : vector<1x8xf32> to vector<16x8xf32>
    %335 = arith.addf %332, %334 : vector<16x8xf32>
    %336 = tpu.iota {dimensions = array<i32: 1>} : vector<16x8xi32>
    %c3_i32 = arith.constant 3 : i32
    %337 = vector.broadcast %c3_i32 : i32 to vector<16x8xi32>
    %338 = arith.cmpi slt, %336, %337 : vector<16x8xi32>
    %339 = arith.negf %335 : vector<16x8xf32>
    %340 = math.exp %339 : vector<16x8xf32>
    %cst_168 = arith.constant 1.000000e+00 : f32
    %341 = vector.broadcast %cst_168 : f32 to vector<16x8xf32>
    %342 = arith.addf %341, %340 : vector<16x8xf32>
    %343 = arith.divf %341, %342 : vector<16x8xf32>
    %344 = arith.select %338, %335, %343 : vector<16x8xi1>, vector<16x8xf32>
    %c0_169 = arith.constant 0 : index
    %c0_170 = arith.constant 0 : index
    %c0_171 = arith.constant 0 : index
    %345 = vector.load %arg25[%c0_169, %c0_170, %c0_171] : memref<1x16x8xf32, #tpu.memory_space<vmem>>, vector<1x16x8xf32>
    %346 = vector.shape_cast %345 : vector<1x16x8xf32> to vector<16x8xf32>
    %347 = vector.shape_cast %344 : vector<16x8xf32> to vector<1x16x8xf32>
    tpu.vector_store %arg25[%c0_169, %c0_170, %c0_171], %347 {strides = array<i32>} : memref<1x16x8xf32, #tpu.memory_space<vmem>>, vector<1x16x8xf32>,
    return
  }
  func.func @transform_0(%arg0: i32) -> (i32, i32, i32) {
    %c0_i32 = arith.constant 0 : i32
    %c0_i32_0 = arith.constant 0 : i32
    %c0_i32_1 = arith.constant 0 : i32
    return %arg0, %c0_i32, %c0_i32_0 : i32, i32, i32
  }
  func.func @transform_1(%arg0: i32) -> (i32, i32, i32) {
    %c0_i32 = arith.constant 0 : i32
    %c0_i32_0 = arith.constant 0 : i32
    %c0_i32_1 = arith.constant 0 : i32
    return %arg0, %c0_i32, %c0_i32_0 : i32, i32, i32
  }
  func.func @transform_2(%arg0: i32) -> (i32, i32) {
    %c0_i32 = arith.constant 0 : i32
    %c0_i32_0 = arith.constant 0 : i32
    %c0_i32_1 = arith.constant 0 : i32
    return %c0_i32, %c0_i32_0 : i32, i32
  }
  func.func @transform_3(%arg0: i32) -> (i32, i32) {
    %c0_i32 = arith.constant 0 : i32
    %c0_i32_0 = arith.constant 0 : i32
    %c0_i32_1 = arith.constant 0 : i32
    return %c0_i32, %c0_i32_0 : i32, i32
  }
  func.func @transform_4(%arg0: i32) -> (i32, i32) {
    %c0_i32 = arith.constant 0 : i32
    %c0_i32_0 = arith.constant 0 : i32
    %c0_i32_1 = arith.constant 0 : i32
    return %c0_i32, %c0_i32_0 : i32, i32
  }
  func.func @transform_5(%arg0: i32) -> (i32, i32) {
    %c0_i32 = arith.constant 0 : i32
    %c0_i32_0 = arith.constant 0 : i32
    %c0_i32_1 = arith.constant 0 : i32
    return %c0_i32, %c0_i32_0 : i32, i32
  }
  func.func @transform_6(%arg0: i32) -> (i32, i32) {
    %c0_i32 = arith.constant 0 : i32
    %c0_i32_0 = arith.constant 0 : i32
    %c0_i32_1 = arith.constant 0 : i32
    return %c0_i32, %c0_i32_0 : i32, i32
  }
  func.func @transform_7(%arg0: i32) -> (i32, i32, i32) {
    %c0_i32 = arith.constant 0 : i32
    %c0_i32_0 = arith.constant 0 : i32
    %c0_i32_1 = arith.constant 0 : i32
    %c0_i32_2 = arith.constant 0 : i32
    return %c0_i32, %c0_i32_0, %c0_i32_1 : i32, i32, i32
  }
  func.func @transform_8(%arg0: i32) -> (i32, i32, i32) {
    %c0_i32 = arith.constant 0 : i32
    %c0_i32_0 = arith.constant 0 : i32
    %c0_i32_1 = arith.constant 0 : i32
    %c0_i32_2 = arith.constant 0 : i32
    return %c0_i32, %c0_i32_0, %c0_i32_1 : i32, i32, i32
  }
  func.func @transform_9(%arg0: i32) -> (i32, i32, i32) {
    %c0_i32 = arith.constant 0 : i32
    %c0_i32_0 = arith.constant 0 : i32
    %c0_i32_1 = arith.constant 0 : i32
    %c0_i32_2 = arith.constant 0 : i32
    return %c0_i32, %c0_i32_0, %c0_i32_1 : i32, i32, i32
  }
  func.func @transform_10(%arg0: i32) -> (i32, i32, i32) {
    %c0_i32 = arith.constant 0 : i32
    %c0_i32_0 = arith.constant 0 : i32
    %c0_i32_1 = arith.constant 0 : i32
    %c0_i32_2 = arith.constant 0 : i32
    return %c0_i32, %c0_i32_0, %c0_i32_1 : i32, i32, i32
  }
  func.func @transform_11(%arg0: i32) -> (i32, i32, i32) {
    %c0_i32 = arith.constant 0 : i32
    %c0_i32_0 = arith.constant 0 : i32
    %c0_i32_1 = arith.constant 0 : i32
    %c0_i32_2 = arith.constant 0 : i32
    return %c0_i32, %c0_i32_0, %c0_i32_1 : i32, i32, i32
  }
  func.func @transform_12(%arg0: i32) -> (i32, i32, i32) {
    %c0_i32 = arith.constant 0 : i32
    %c0_i32_0 = arith.constant 0 : i32
    %c0_i32_1 = arith.constant 0 : i32
    %c0_i32_2 = arith.constant 0 : i32
    return %c0_i32, %c0_i32_0, %c0_i32_1 : i32, i32, i32
  }
  func.func @transform_13(%arg0: i32) -> (i32, i32, i32) {
    %c0_i32 = arith.constant 0 : i32
    %c0_i32_0 = arith.constant 0 : i32
    %c0_i32_1 = arith.constant 0 : i32
    %c0_i32_2 = arith.constant 0 : i32
    return %c0_i32, %c0_i32_0, %c0_i32_1 : i32, i32, i32
  }
  func.func @transform_14(%arg0: i32) -> (i32, i32, i32) {
    %c0_i32 = arith.constant 0 : i32
    %c0_i32_0 = arith.constant 0 : i32
    %c0_i32_1 = arith.constant 0 : i32
    %c0_i32_2 = arith.constant 0 : i32
    return %c0_i32, %c0_i32_0, %c0_i32_1 : i32, i32, i32
  }
  func.func @transform_15(%arg0: i32) -> (i32, i32, i32) {
    %c0_i32 = arith.constant 0 : i32
    %c0_i32_0 = arith.constant 0 : i32
    %c0_i32_1 = arith.constant 0 : i32
    %c0_i32_2 = arith.constant 0 : i32
    return %c0_i32, %c0_i32_0, %c0_i32_1 : i32, i32, i32
  }
  func.func @transform_16(%arg0: i32) -> (i32, i32, i32) {
    %c0_i32 = arith.constant 0 : i32
    %c0_i32_0 = arith.constant 0 : i32
    %c0_i32_1 = arith.constant 0 : i32
    %c0_i32_2 = arith.constant 0 : i32
    return %c0_i32, %c0_i32_0, %c0_i32_1 : i32, i32, i32
  }
  func.func @transform_17(%arg0: i32) -> (i32, i32, i32) {
    %c0_i32 = arith.constant 0 : i32
    %c0_i32_0 = arith.constant 0 : i32
    %c0_i32_1 = arith.constant 0 : i32
    %c0_i32_2 = arith.constant 0 : i32
    return %c0_i32, %c0_i32_0, %c0_i32_1 : i32, i32, i32
  }
  func.func @transform_18(%arg0: i32) -> (i32, i32, i32) {
    %c0_i32 = arith.constant 0 : i32
    %c0_i32_0 = arith.constant 0 : i32
    %c0_i32_1 = arith.constant 0 : i32
    %c0_i32_2 = arith.constant 0 : i32
    return %c0_i32, %c0_i32_0, %c0_i32_1 : i32, i32, i32
  }
  func.func @transform_19(%arg0: i32) -> (i32, i32) {
    %c0_i32 = arith.constant 0 : i32
    %c0_i32_0 = arith.constant 0 : i32
    %c0_i32_1 = arith.constant 0 : i32
    return %c0_i32, %c0_i32_0 : i32, i32
  }
  func.func @transform_20(%arg0: i32) -> (i32, i32) {
    %c0_i32 = arith.constant 0 : i32
    %c0_i32_0 = arith.constant 0 : i32
    %c0_i32_1 = arith.constant 0 : i32
    return %c0_i32, %c0_i32_0 : i32, i32
  }
  func.func @transform_21(%arg0: i32) -> (i32, i32) {
    %c0_i32 = arith.constant 0 : i32
    %c0_i32_0 = arith.constant 0 : i32
    %c0_i32_1 = arith.constant 0 : i32
    return %c0_i32, %c0_i32_0 : i32, i32
  }
  func.func @transform_22(%arg0: i32) -> (i32, i32) {
    %c0_i32 = arith.constant 0 : i32
    %c0_i32_0 = arith.constant 0 : i32
    %c0_i32_1 = arith.constant 0 : i32
    return %c0_i32, %c0_i32_0 : i32, i32
  }
  func.func @transform_23(%arg0: i32) -> (i32, i32, i32) {
    %c0_i32 = arith.constant 0 : i32
    %c0_i32_0 = arith.constant 0 : i32
    %c0_i32_1 = arith.constant 0 : i32
    return %arg0, %c0_i32, %c0_i32_0 : i32, i32, i32
  }
  func.func @transform_24(%arg0: i32) -> (i32, i32, i32) {
    %c0_i32 = arith.constant 0 : i32
    %c0_i32_0 = arith.constant 0 : i32
    %c0_i32_1 = arith.constant 0 : i32
    return %arg0, %c0_i32, %c0_i32_0 : i32, i32, i32
  }
}

</mosaic_0001>

<bundles_post_ra>
// kernel: table_detection_forward.1
= control target key start
LH: loop header
LB: loop body
LE: loop exit
PB: predicated region body
PF: predicated region fallthrough
CT: control target
= control target key end

     0   :  { %s4450_s0 = inlined_call_operand.vmem [shape: f32[2,8,32], index: 0, kind: input, shape index: {}]   ;;  %s4451_s1 = inlined_call_operand.vmem [shape: f32[2,4,192], index: 1, kind: input, shape index: {}]   ;;  %s4452_s2 = inlined_call_operand.vmem [shape: f32[192,32], index: 2, kind: input, shape index: {}]   ;;  %s4453_s3 = inlined_call_operand.vmem [shape: f32[1,32], index: 3, kind: input, shape index: {}]   ;;  %s4454_s4 = inlined_call_operand.vmem [shape: f32[4,32], index: 4, kind: input, shape index: {}]   ;;  %s4455_s5 = inlined_call_operand.vmem [shape: f32[1,32], index: 5, kind: input, shape index: {}]   ;;  %s4456_s6 = inlined_call_operand.vmem [shape: f32[1,32], index: 6, kind: input, shape index: {}]   ;;  %s4457_s7 = inlined_call_operand.vmem [shape: f32[2,32,96], index: 7, kind: input, shape index: {}]   ;;  %s4458_s8 = inlined_call_operand.vmem [shape: f32[2,1,96], index: 8, kind: input, shape index: {}]   ;;  %s4459_s9 = inlined_call_operand.vmem [shape: f32[2,32,32], index: 9, kind: input, shape index: {}]   ;;  %s4460_s10 = inlined_call_operand.vmem [shape: f32[2,1,32], index: 10, kind: input, shape index: {}]   ;;  %s4461_s11 = inlined_call_operand.vmem [shape: f32[2,1,32], index: 11, kind: input, shape index: {}]   ;;  %s4462_s12 = inlined_call_operand.vmem [shape: f32[2,1,32], index: 12, kind: input, shape index: {}]   ;;  %s4463_s13 = inlined_call_operand.vmem [shape: f32[2,32,128], index: 13, kind: input, shape index: {}]   ;;  %s4464_s14 = inlined_call_operand.vmem [shape: f32[2,1,128], index: 14, kind: input, shape index: {}]   ;;  %s4465_s15 = inlined_call_operand.vmem [shape: f32[2,128,32], index: 15, kind: input, shape index: {}]   ;;  %s4466_s16 = inlined_call_operand.vmem [shape: f32[2,1,32], index: 16, kind: input, shape index: {}]   ;;  %s4467_s17 = inlined_call_operand.vmem [shape: f32[2,1,32], index: 17, kind: input, shape index: {}]   ;;  %s4468_s18 = inlined_call_operand.vmem [shape: f32[2,1,32], index: 18, kind: input, shape index: {}]   ;;  %s4469_s19 = inlined_call_operand.vmem [shape: f32[32,32], index: 19, kind: input, shape index: {}]   ;;  %s4470_s20 = inlined_call_operand.vmem [shape: f32[1,32], index: 20, kind: input, shape index: {}]   ;;  %s4471_s21 = inlined_call_operand.vmem [shape: f32[32,8], index: 21, kind: input, shape index: {}]   ;;  %s4472_s22 = inlined_call_operand.vmem [shape: f32[1,8], index: 22, kind: input, shape index: {}]   ;;  %s4473_s23 = inlined_call_operand.vmem [shape: f32[2,16,32], index: 23, kind: output, shape index: {0}]   ;;  %s4474_s24 = inlined_call_operand.vmem [shape: f32[2,16,8], index: 24, kind: output, shape index: {1}]  }
   0x1   :  { %4483 = sst [smem:[#allocation3_spill]] %s4450_s0 }
   0x2   :  { %4484 = sst [smem:[#allocation4_spill]] %s4451_s1 }
   0x3   :  { %4485 = sst [smem:[#allocation5_spill]] %s4452_s2 }
   0x4   :  { %4486 = sst [smem:[#allocation6_spill]] %s4453_s3 }
   0x5   :  { %4487 = sst [smem:[#allocation7_spill]] %s4454_s4 }
   0x6   :  { %4488 = sst [smem:[#allocation8_spill]] %s4455_s5  ;;  %s3872_s5 = smov 0  }
   0x7   :  { %4489 = sst [smem:[#allocation9_spill]] %s4456_s6 }
   0x8   :  { %4490 = sst [smem:[#allocation10_spill]] %s4457_s7 }
   0x9   :  { %4491 = sst [smem:[#allocation11_spill]] %s4458_s8 }
   0xa LB: > { %4492 = sst [smem:[#allocation2_spill]] %s3738_s5  ;;  %s3187_s26 = sadd.s32 4294967295, %s3738_s5   ;;  %s3738_s5 = sphi %s3872_s5, %s35_s5  }
   0xb   : > { %p3191_p0 = scmp.ge.s32.totalorder %s3738_s5, 1  ;;  %p674_p1 = scmp.lt.s32.totalorder %s3738_s5, 3 }
   0xd   : > { %p675_p2 = pnand %p3191_p0, %p674_p1 }
   0xe   : > { %s4493_s6 = sld [smem:[#allocation5_spill]] (!%p675_p2)  ;;  %p749_p3 = scmp.lt.s32.totalorder (!%p675_p2), %s3187_s26, 1 }
   0xf   : > { %678 = sbr.rel (%p675_p2) target bundleno = 6092 (0x17cc), region = 112  ;;  %s4494_s1 = sld [smem:[#allocation4_spill]] (!%p675_p2) }
  0x10   : > { %s4495_s29 = sld [smem:[#allocation3_spill]] (!%p675_p2)  ;;  %s4481_s0 = smov (!%p675_p2), 112  }
  0x11   : > { %s4496_s25 = sld [smem:[#allocation6_spill]] (!%p675_p2)  ;;  %s3743_s7 = smov (!%p675_p2), 80  }
  0x12   : > { %s4500_s3 = sld [smem:[#allocation10_spill]] (!%p675_p2) }
  0x13   : > { %s4501_s2 = sld [smem:[#allocation11_spill]] (!%p675_p2) }
  0x14   : > { %v784_v0 = vld [vmem:[%s4493_s6 + $0x78] sm:$0xff]  ;;  %v3740_v1 = vmov 0.0   ;;  %v783_v2 = vld [vmem:[%s4493_s6 + $0x70] sm:$0xff]  ;;  %s4506_s26 = smov (!%p749_p3, %s3187_s26), 1  ;;  %v782_v3 = vld [vmem:[%s4493_s6 + $0x68] sm:$0xff]  ;;  %vm882_vm0 = vcmask 261120  }
  0x15   : > { %805 = vmatprep.subr.mxu0 %v3740_v1  ;;  %s3192_s30 = sshll.u32 %s4506_s26, 3  ;;  %v781_v4 = vld [vmem:[%s4493_s6 + $0x60] sm:$0xff]  ;;  %v780_v5 = vld [vmem:[%s4493_s6 + $0x58] sm:$0xff]  ;;  %vm802_vm1 = vcmask 523264   ;;  %v779_v8 = vld [vmem:[%s4493_s6 + $0x50] sm:$0xff]  ;;  %vm878_vm2 = vcmask 1043456  }
  0x16   : > { %806 = vmatpush1.msra.mxu0 %v784_v0  ;;  %s757_s27 = scalar_lea.vmem %s4494_s1, %s3192_s30  ;;  %s752_s5 = scalar_lea.vmem %s4495_s29, %s3192_s30  ;;  %v778_v11 = vld [vmem:[%s4493_s6 + $0x48] sm:$0xff]  ;;  %v777_v12 = vld [vmem:[%s4493_s6 + $0x40] sm:$0xff]  ;;  %v776_v13 = vld [vmem:[%s4493_s6 + $0x38] sm:$0xff]  ;;  %vm1034_vm3 = vcmask 130048   ;;  %vm3084_vm6 = vcmask 64512  }
  0x17   : > { %807 = vmatprep.subr.mxu0 %v3740_v1  ;;  %v3908_v6 = vld [vmem:[%s757_s27] sm:$0xff]  ;;  %v775_v14 = vld [vmem:[%s4493_s6 + $0x30] sm:$0xff]  ;;  %v774_v15 = vld [vmem:[%s4493_s6 + $0x28] sm:$0xff]  ;;  %s4498_s27 = sld [smem:[#allocation8_spill]]  ;;  %s3746_s30 = smov 64  }
  0x18   : > { %808 = vmatpush1.msra.mxu0 %v783_v2  ;;  %v3910_v7 = vld [vmem:[%s752_s5] sm:$0xff]  ;;  %v801_v9 = vcombine.high %v3908_v6, %v3908_v6  ;;  %v772_v17 = vld [vmem:[%s4493_s6 + $0x18] sm:$0xff]  ;;  %v771_v18 = vld [vmem:[%s4493_s6 + $0x10] sm:$0xff]  ;;  %s4497_s5 = sld [smem:[#allocation7_spill]]  ;;  %s3306_s1 = sshll.u32 %s4506_s26, 4 }
  0x19   : > { %809 = vmatprep.subr.mxu0 %v3740_v1  ;;  %v883_v10 = vsel %vm882_vm0, %v3910_v7, 0.0  ;;  %v773_v16 = vld [vmem:[%s4493_s6 + $0x20] sm:$0xff]  ;;  %v770_v19 = vld [vmem:[%s4493_s6 + $0x8] sm:$0xff]  ;;  %v792_v21 = vld [vmem:[%s4493_s6 + $0xb8] sm:$0xff]  ;;  %s4499_s29 = sld [smem:[#allocation9_spill]]  ;;  %s767_s4 = scalar_lea.vmem %s4474_s24, %s3306_s1 }
  0x1a   : > { %810 = vmatpush1.msra.mxu0 %v782_v3  ;;  %884 = vadd.xlane.f32.xlu0 %v883_v10  ;;  %v769_v20 = vld [vmem:[%s4493_s6] sm:$0xff]  ;;  %v791_v22 = vld [vmem:[%s4493_s6 + $0xb0] sm:$0xff]  ;;  %v790_v23 = vld [vmem:[%s4493_s6 + $0xa8] sm:$0xff] }
  0x1b   : > { %811 = vmatprep.subr.mxu0 %v3740_v1  ;;  %3200 = vmatprep.mubr.msk.f32.mxu0 %vm802_vm1, %v801_v9  ;;  %v789_v24 = vld [vmem:[%s4493_s6 + $0xa0] sm:$0xff]  ;;  %v788_v25 = vld [vmem:[%s4493_s6 + $0x98] sm:$0xff]  ;;  %v787_v26 = vld [vmem:[%s4493_s6 + $0x90] sm:$0xff] }
  0x1c   : > { %812 = vmatpush1.msra.mxu0 %v781_v4  ;;  %v786_v27 = vld [vmem:[%s4493_s6 + $0x88] sm:$0xff]  ;;  %v785_v28 = vld [vmem:[%s4493_s6 + $0x80] sm:$0xff]  ;;  %v933_v56 = vld [vmem:[%s4500_s3 + $0x18] sm:$0xff] }
  0x1d   : > { %813 = vmatprep.subr.mxu0 %v3740_v1  ;;  %v3199_v34 = vld [vmem:[%s4496_s25] ss:$0 sm:$0xff]  ;;  %v932_v57 = vld [vmem:[%s4500_s3 + $0x10] sm:$0xff]  ;;  %3428 = vmatprep.subr.mxu1 %v933_v56  ;;  %v931_v58 = vld [vmem:[%s4500_s3 + $0x8] sm:$0xff]  ;;  %s4479_s25 = smov 48  }
  0x1e   : > { %814 = vmatpush1.msra.mxu0 %v780_v5  ;;  %v875_v36 = vld [vmem:[%s4497_s5] sm:$0xf]  ;;  %3429 = vmatpush3.msra.mxu1 %v933_v56 }
  0x1f   : > { %815 = vmatprep.subr.mxu0 %v3740_v1  ;;  %v3201_v46 = vld [vmem:[%s4498_s27] ss:$0 sm:$0xff]  ;;  %3430 = vmatprep.subr.mxu1 %v932_v57 }
  0x20   : > { %816 = vmatpush1.msra.mxu0 %v779_v8  ;;  %v3202_v48 = vld [vmem:[%s4499_s29] ss:$0 sm:$0xff]  ;;  %3431 = vmatpush3.msra.mxu1 %v932_v57  ;;  %s3741_s29 = smov 96  }
  0x21   : > { %817 = vmatprep.subr.mxu0 %v3740_v1  ;;  %v930_v59 = vld [vmem:[%s4500_s3] sm:$0xff]  ;;  %3432 = vmatprep.subr.mxu1 %v931_v58 }
  0x22   : > { %818 = vmatpush1.msra.mxu0 %v778_v11  ;;  %3433 = vmatpush3.msra.mxu1 %v931_v58  ;;  %v3203_v3 = vld [vmem:[%s4501_s2] ss:$0 sm:$0xff] }
  0x23   : > { %819 = vmatprep.subr.mxu0 %v3740_v1  ;;  %3434 = vmatprep.subr.mxu1 %v930_v59 }
  0x24   : > { %820 = vmatpush1.msra.mxu0 %v777_v12  ;;  %3435 = vmatpush3.msra.mxu1 %v930_v59 }
  0x25   : > { %821 = vmatprep.subr.mxu0 %v3740_v1 }
  0x26   : > { %822 = vmatpush1.msra.mxu0 %v776_v13 }
  0x27   : > { %823 = vmatprep.subr.mxu0 %v3740_v1 }
  0x28   : > { %824 = vmatpush1.msra.mxu0 %v775_v14 }
  0x29   : > { %825 = vmatprep.subr.mxu0 %v3740_v1 }
  0x2a   : > { %826 = vmatpush1.msra.mxu0 %v774_v15 }
  0x2b   : > { %827 = vmatprep.subr.mxu0 %v3740_v1 }
  0x2c   : > { %828 = vmatpush1.msra.mxu0 %v773_v16  ;;  %v926_v16 = vlaneseq }
  0x2d   : > { %829 = vmatprep.subr.mxu0 %v3740_v1 }
  0x2e   : > { %830 = vmatpush1.msra.mxu0 %v772_v17  ;;  %v4061_v17 = vand.u32 127, %v926_v16 }
  0x2f   : > { %831 = vmatprep.subr.mxu0 %v3740_v1 }
  0x30   : > { %832 = vmatpush1.msra.mxu0 %v771_v18  ;;  %vm928_vm4 = vcmp.lt.s32.totalorder %v4061_v17, 12  ;;  %vm3069_vm5 = vcmp.lt.s32.totalorder %v4061_v17, 3 }
  0x31   : > { %833 = vmatprep.subr.mxu0 %v3740_v1 }
  0x32   : > { %834 = vmatpush1.msra.mxu0 %v770_v19 }
  0x33   : > { %835 = vmatprep.subr.mxu0 %v3740_v1 }
  0x34   : > { %836 = vmatpush1.msra.mxu0 %v769_v20  ;;  %v3744_v20 = vmov -1e+09  }
  0x35   : > { %853 = vmatprep.subr.mxu0 %v3740_v1 }
  0x36   : > { %854 = vmatpush2.msra.mxu0 %v792_v21  ;;  %v4064_v21 = vsel %vm928_vm4, 0.0, %v3744_v20 }
  0x37   : > { %855 = vmatprep.subr.mxu0 %v3740_v1 }
  0x38   : > { %856 = vmatpush2.msra.mxu0 %v791_v22 }
  0x39   : > { %857 = vmatprep.subr.mxu0 %v3740_v1 }
  0x3a   : > { %858 = vmatpush2.msra.mxu0 %v790_v23 }
  0x3b   : > { %859 = vmatprep.subr.mxu0 %v3740_v1 }
  0x3c   : > { %860 = vmatpush2.msra.mxu0 %v789_v24 }
  0x3d   : > { %861 = vmatprep.subr.mxu0 %v3740_v1 }
  0x3e   : > { %862 = vmatpush2.msra.mxu0 %v788_v25 }
  0x3f   : > { %863 = vmatprep.subr.mxu0 %v3740_v1 }
  0x40   : > { %864 = vmatpush2.msra.mxu0 %v787_v26 }
  0x41   : > { %865 = vmatprep.subr.mxu0 %v3740_v1 }
  0x42   : > { %866 = vmatpush2.msra.mxu0 %v786_v27 }
  0x43   : > { %867 = vmatprep.subr.mxu0 %v3740_v1 }
  0x44   : > { %868 = vmatpush2.msra.mxu0 %v785_v28 }
  0x45   : > { %870 = vmatmul.mubr.f32.vlgmr.msra.gmra.mxu0 %v3908_v6 }
  0xa3   : > { %v885_v29 = vpop.xlane.xlu0 %884 }
  0xa4   : > { %v890_v30 = vmul.f32 0.03125, %v885_v29 }
  0xa6   : > { %v892_v31 = vsub.f32 %v3910_v7, %v890_v30 }
  0xa8   : > { %v894_v32 = vmul.f32 %v892_v31, %v892_v31 }
  0xaa   : > { %v896_v33 = vsel %vm882_vm0, %v894_v32, 0.0 }
  0xab   : > { %897 = vadd.xlane.f32.xlu1 %v896_v33 }
 0x105   : > { %v871_v35 = vpop.f32.mrf.mxu0 }
 0x106   : > { %v872_v37 = vadd.f32 %v3199_v34, %v871_v35 }
 0x107   : > { %v873_v38 = vpop.f32.mrf.mxu0 }
 0x108   : > { %v876_v39 = vadd.f32 %v875_v36, %v872_v37 }
 0x10a   : > { %v879_v40 = vsel %vm878_vm2, %v876_v39, 0.0 }
 0x10b   : > { %v886_v41 = vsel %vm882_vm0, %v879_v40, 0.0 }
 0x10c   : > { %887 = vadd.xlane.f32.xlu0 %v886_v41 }
 0x134   : > { %v898_v42 = vpop.xlane.xlu1 %897 }
 0x135   : > { %v902_v43 = vmul.f32 0.03125, %v898_v42 }
 0x137   : > { %v904_v44 = vadd.f32 1e-12, %v902_v43 }
 0x139   : > { %3664 = vrsqrt.f32 %v904_v44 }
 0x146   : > { %v3665_v45 = vpop.eup %3664 }
 0x147   : > { %v908_v47 = vmul.f32 %v3665_v45, %v892_v31 }
 0x149   : > { %v916_v49 = vmul.f32 %v3201_v46, %v908_v47 }
 0x14b   : > { %v4009_v50 = vadd.f32 %v3202_v48, %v916_v49 }
 0x14d   : > { %3436 = vmatprep.mubr.msk.f32.mxu1 %vm882_vm0, %v4009_v50 }
 0x195   : > { %v888_v51 = vpop.xlane.xlu0 %887 }
 0x196   : > { %v891_v52 = vmul.f32 0.03125, %v888_v51 }
 0x198   : > { %v893_v53 = vsub.f32 %v879_v40, %v891_v52 }
 0x19a   : > { %v895_v54 = vmul.f32 %v893_v53, %v893_v53 }
 0x19c   : > { %v899_v55 = vsel %vm882_vm0, %v895_v54, 0.0 }
 0x19d   : > { %900 = vadd.xlane.f32.xlu1 %v899_v55 }
 0x226   : > { %v901_v60 = vpop.xlane.xlu1 %900 }
 0x227   : > { %v903_v61 = vmul.f32 0.03125, %v901_v60 }
 0x229   : > { %v905_v62 = vadd.f32 1e-12, %v903_v61 }
 0x22b   : > { %3666 = vrsqrt.f32 %v905_v62 }
 0x238   : > { %v3667_v63 = vpop.eup %3666 }
 0x239   : > { %v909_v0 = vmul.f32 %v3667_v63, %v893_v53 }
 0x23b   : > { %v917_v1 = vmul.f32 %v3201_v46, %v909_v0 }
 0x23d   : > { %v4026_v2 = vadd.f32 %v3202_v48, %v917_v1 }
 0x23f   : > { %3437 = vmatmul.mubr.msk.f32.vlgmr.msra.gmra.mxu1 %vm882_vm0, %v4026_v2 }
 0x2ff   : > { %v3438_v4 = vpop.f32.mrf.mxu1 }
 0x300   : > { %v4033_v5 = vadd.f32 %v3438_v4, %v3203_v3 }
 0x301   : > { %v1013_v6 = vpop.f32.mrf.mxu1 }
 0x302   : > { %v4035_v7 = vadd.f32 %v3203_v3, %v1013_v6  ;;  %1032 = vrot.lane.b32.xlu0 %v4033_v5, %s3741_s29  ;;  %v1027_v9 = vmul.f32 0.25, %v4033_v5  ;;  %v1025_v6 = vld [vmem:[%s4459_s9 + $0x18] sm:$0xff] }
 0x304   : > { %1030 = vrot.lane.b32.xlu1 %v4035_v7, %s3741_s29  ;;  %v1026_v8 = vmul.f32 0.25, %v4035_v7 }
 0x306   : > { %1229 = vrot.lane.b32.xlu0 %v1026_v8, %s4481_s0  ;;  %3443 = vmatprep.mubr.msk.f32.mxu1 %vm1034_vm3, %v1026_v8  ;;  %v1023_v8 = vld [vmem:[%s4459_s9 + $0x8] sm:$0xff] }
 0x308   : > { %1235 = vrot.lane.b32.xlu1 %v4033_v5, %s3743_s7 }
 0x30c   : > { %1233 = vrot.lane.b32.xlu1 %v4035_v7, %s3743_s7 }
 0x310   : > { %1231 = vrot.lane.b32.xlu1 %v1027_v9, %s4481_s0  ;;  %s762_s0 = scalar_lea.vmem %s4473_s23, %s3306_s1 }
 0x374   : > { %v1033_v10 = vpop.permute.xlu0 %1032 }
 0x375   : > { %3439 = vmatprep.subr.msk.mxu1 %vm1034_vm3, %v1033_v10 }
 0x376   : > { %3440 = vmatpush3.xpose.msk.msra.mxu1 %vm1034_vm3, %v1033_v10  ;;  %v1031_v11 = vpop.permute.xlu1 %1030 }
 0x377   : > { %3441 = vmatprep.subr.msk.mxu1 %vm1034_vm3, %v1031_v11 }
 0x378   : > { %v1230_v13 = vpop.permute.xlu0 %1229 }
 0x37a   : > { %3442 = vmatpush3.xpose.msk.msra.mxu1 %vm1034_vm3, %v1031_v11  ;;  %v1236_v12 = vpop.permute.xlu1 %1235 }
 0x37b   : > { %3453 = vmatprep.subr.msk.mxu1 %vm1034_vm3, %v1236_v12 }
 0x37d   : > { %3444 = vmatmul.mubr.msk.f32.vlgmr.msra.gmra.mxu1 %vm1034_vm3, %v1027_v9 }
 0x37e   : > { %v1234_v14 = vpop.permute.xlu1 %1233  ;;  %3454 = vmatpush3.xpose.msk.msra.mxu1 %vm1034_vm3, %v1236_v12  ;;  %3457 = vmatprep.mubr.msk.f32.mxu1 %vm1034_vm3, %v1230_v13  ;;  %v1022_v12 = vld [vmem:[%s4459_s9] sm:$0xff] }
 0x37f   : > { %3455 = vmatprep.subr.msk.mxu1 %vm1034_vm3, %v1234_v14 }
 0x382   : > { %3456 = vmatpush3.xpose.msk.msra.mxu1 %vm1034_vm3, %v1234_v14  ;;  %v1232_v15 = vpop.permute.xlu1 %1231 }
 0x385   : > { %3458 = vmatmul.mubr.msk.f32.vlgmr.msra.gmra.mxu1 %vm1034_vm3, %v1232_v15 }
 0x43d   : > { %v3445_v18 = vpop.f32.mrf.mxu1 }
 0x43e   : > { %v1117_v29 = vadd.f32 %v3445_v18, %v4064_v21  ;;  %v3222_v18 = vld [vmem:[%s4460_s10] ss:$0 sm:$0xff] }
 0x43f   : > { %v1111_v19 = vpop.f32.mrf.mxu1 }
 0x440   : > { %v1112_v27 = vadd.f32 %v1111_v19, %v4064_v21  ;;  %v1123_v31 = vsel %vm1034_vm3, %v1117_v29, -inf }
 0x442   : > { %v1120_v30 = vsel %vm1034_vm3, %v1112_v27, -inf }
 0x445   : > { %v3459_v22 = vpop.f32.mrf.mxu1 }
 0x446   : > { %v1317_v23 = vadd.f32 %v3459_v22, %v4064_v21 }
 0x447   : > { %v1311_v24 = vpop.f32.mrf.mxu1 }
 0x448   : > { %v1312_v25 = vadd.f32 %v1311_v24, %v4064_v21  ;;  %v1323_v26 = vsel %vm1034_vm3, %v1317_v23, -inf }
 0x449   : > { %1324 = vmax.xlane.f32.xlu1 %v1323_v26 }
 0x44a   : > { %v1320_v28 = vsel %vm1034_vm3, %v1312_v25, -inf }
 0x44b   : > { %1321 = vmax.xlane.f32.xlu0 %v1320_v28 }
 0x44f   : > { %1121 = vmax.xlane.f32.xlu0 %v1120_v30 }
 0x453   : > { %1124 = vmax.xlane.f32.xlu0 %v1123_v31 }
 0x4d2   : > { %v1325_v34 = vpop.xlane.xlu1 %1324 }
 0x4d3   : > { %v1327_v37 = vsub.f32 %v1317_v23, %v1325_v34 }
 0x4d4   : > { %v1322_v32 = vpop.xlane.xlu0 %1321 }
 0x4d5   : > { %v1326_v33 = vsub.f32 %v1312_v25, %v1322_v32  ;;  %v1330_v42 = vmul.f32 1.442695, %v1327_v37 }
 0x4d7   : > { %v1328_v38 = vmul.f32 1.442695, %v1326_v33 }
 0x4d8   : > { %v1122_v35 = vpop.xlane.xlu0 %1121 }
 0x4d9   : > { %v1126_v36 = vsub.f32 %v1112_v27, %v1122_v35 }
 0x4db   : > { %v1128_v39 = vmul.f32 1.442695, %v1126_v36 }
 0x4dc   : > { %v1125_v40 = vpop.xlane.xlu0 %1124 }
 0x4dd   : > { %3668 = vpow2.f32 %v1128_v39  ;;  %v1127_v41 = vsub.f32 %v1117_v29, %v1125_v40  ;;  %v1647_v39 = vld [vmem:[%s4463_s13 + $0x8] sm:$0xff]  ;;  %v1646_v40 = vld [vmem:[%s4463_s13] sm:$0xff] }
 0x4de   : > { %3670 = vpow2.f32 %v1328_v38  ;;  %v1648_v38 = vld [vmem:[%s4463_s13 + $0x10] sm:$0xff] }
 0x4df   : > { %v1130_v43 = vmul.f32 1.442695, %v1127_v41 }
 0x4e1   : > { %3672 = vpow2.f32 %v1130_v43 }
 0x4e2   : > { %3674 = vpow2.f32 %v1330_v42 }
 0x4ea   : > { %v3669_v44 = vpop.eup %3668 }
 0x4eb   : > { %v1132_v45 = vsel %vm1034_vm3, %v3669_v44, 0.0  ;;  %v3671_v46 = vpop.eup %3670 }
 0x4ec   : > { %1133 = vadd.xlane.f32.xlu0 %v1132_v45  ;;  %v1332_v48 = vsel %vm1034_vm3, %v3671_v46, 0.0 }
 0x4ee   : > { %v3673_v47 = vpop.eup %3672 }
 0x4ef   : > { %v1135_v49 = vsel %vm1034_vm3, %v3673_v47, 0.0  ;;  %v3675_v51 = vpop.eup %3674 }
 0x4f0   : > { %1333 = vadd.xlane.f32.xlu0 %v1332_v48  ;;  %1136 = vadd.xlane.f32.xlu1 %v1135_v49  ;;  %v1335_v52 = vsel %vm1034_vm3, %v3675_v51, 0.0  ;;  %v3223_v48 = vld [vmem:[%s4461_s11] ss:$0 sm:$0xff] }
 0x4f4   : > { %1336 = vadd.xlane.f32.xlu1 %v1335_v52 }
 0x505   : > { %1342 = vrot.lane.b32.xlu1 %v4035_v7, %s4479_s25 }
 0x506   : > { %1344 = vrot.lane.b32.xlu0 %v4033_v5, %s4479_s25 }
 0x509   : > { %1144 = vrot.lane.b32.xlu1 %v4033_v5, %s3746_s30 }
 0x50d   : > { %1142 = vrot.lane.b32.xlu1 %v4035_v7, %s3746_s30  ;;  %v1024_v7 = vld [vmem:[%s4459_s9 + $0x10] sm:$0xff] }
 0x575   : > { %v1134_v53 = vpop.xlane.xlu0 %1133 }
 0x576   : > { %3676 = vrcp.f32 %v1134_v53 }
 0x579   : > { %v1137_v54 = vpop.xlane.xlu1 %1136  ;;  %v1334_v55 = vpop.xlane.xlu0 %1333 }
 0x57a   : > { %3678 = vrcp.f32 %v1137_v54 }
 0x57b   : > { %3680 = vrcp.f32 %v1334_v55 }
 0x57d   : > { %v1337_v56 = vpop.xlane.xlu1 %1336  ;;  %v1345_v57 = vpop.permute.xlu0 %1344 }
 0x57e   : > { %3682 = vrcp.f32 %v1337_v56  ;;  %3460 = vmatprep.subr.mxu1 %v1345_v57 }
 0x57f   : > { %3461 = vmatpush3.msra.mxu1 %v1345_v57 }
 0x581   : > { %v1343_v58 = vpop.permute.xlu1 %1342 }
 0x582   : > { %3462 = vmatprep.subr.mxu1 %v1343_v58 }
 0x583   : > { %v3677_v59 = vpop.eup %3676  ;;  %3463 = vmatpush3.msra.mxu1 %v1343_v58  ;;  %v1771_v58 = vld [vmem:[%s4465_s15 + $0x78] sm:$0xff] }
 0x584   : > { %v1140_v60 = vmul.f32 %v3677_v59, %v3669_v44  ;;  %3467 = vmatprep.subr.mxu1 %v1025_v6  ;;  %v1770_v59 = vld [vmem:[%s4465_s15 + $0x70] sm:$0xff] }
 0x585   : > { %v1145_v61 = vpop.permute.xlu1 %1144 }
 0x586   : > { %3446 = vmatprep.subr.mxu0 %v1145_v61  ;;  %3450 = vmatprep.mubr.msk.f32.mxu0 %vm1034_vm3, %v1140_v60  ;;  %v1769_v60 = vld [vmem:[%s4465_s15 + $0x68] sm:$0xff] }
 0x587   : > { %v3679_v62 = vpop.eup %3678  ;;  %3447 = vmatpush3.msra.mxu0 %v1145_v61  ;;  %v1768_v61 = vld [vmem:[%s4465_s15 + $0x60] sm:$0xff] }
 0x588   : > { %v3681_v63 = vpop.eup %3680  ;;  %v1141_v3 = vmul.f32 %v3679_v62, %v3673_v47  ;;  %v1767_v62 = vld [vmem:[%s4465_s15 + $0x58] sm:$0xff] }
 0x589   : > { %v1143_v0 = vpop.permute.xlu1 %1142  ;;  %v1340_v1 = vmul.f32 %v3681_v63, %v3671_v46  ;;  %v1766_v63 = vld [vmem:[%s4465_s15 + $0x50] sm:$0xff] }
 0x58a   : > { %3448 = vmatprep.subr.mxu0 %v1143_v0 }
 0x58b   : > { %v3683_v4 = vpop.eup %3682  ;;  %3464 = vmatprep.mubr.msk.f32.mxu1 %vm1034_vm3, %v1340_v1  ;;  %3449 = vmatpush3.msra.mxu0 %v1143_v0  ;;  %v1765_v0 = vld [vmem:[%s4465_s15 + $0x48] sm:$0xff]  ;;  %v1764_v1 = vld [vmem:[%s4465_s15 + $0x40] sm:$0xff] }
 0x58c   : > { %3451 = vmatmul.mubr.msk.f32.vlgmr.msra.gmra.mxu0 %vm1034_vm3, %v1141_v3  ;;  %v1341_v5 = vmul.f32 %v3683_v4, %v3675_v51  ;;  %v3224_v51 = vld [vmem:[%s4462_s12] ss:$0 sm:$0xff]  ;;  %3492 = vmatprep.subr.mxu0 %v1771_v58  ;;  %v1763_v3 = vld [vmem:[%s4465_s15 + $0x38] sm:$0xff]  ;;  %v1762_v4 = vld [vmem:[%s4465_s15 + $0x30] sm:$0xff] }
 0x58d   : > { %3493 = vmatpush3.msra.mxu0 %v1771_v58 }
 0x58e   : > { %3465 = vmatmul.mubr.msk.f32.vlgmr.msra.gmra.mxu1 %vm1034_vm3, %v1341_v5  ;;  %3494 = vmatprep.subr.mxu0 %v1770_v59  ;;  %v1761_v5 = vld [vmem:[%s4465_s15 + $0x28] sm:$0xff] }
 0x58f   : > { %3468 = vmatpush3.msra.mxu1 %v1025_v6  ;;  %3495 = vmatpush3.msra.mxu0 %v1770_v59  ;;  %v1760_v6 = vld [vmem:[%s4465_s15 + $0x20] sm:$0xff] }
 0x590   : > { %3469 = vmatprep.subr.mxu1 %v1024_v7  ;;  %3496 = vmatprep.subr.mxu0 %v1769_v60 }
 0x591   : > { %3470 = vmatpush3.msra.mxu1 %v1024_v7  ;;  %3497 = vmatpush3.msra.mxu0 %v1769_v60  ;;  %v1759_v7 = vld [vmem:[%s4465_s15 + $0x18] sm:$0xff] }
 0x592   : > { %3474 = vmatprep.subr.mxu1 %v1023_v8  ;;  %3498 = vmatprep.subr.mxu0 %v1768_v61 }
 0x593   : > { %3499 = vmatpush3.msra.mxu0 %v1768_v61 }
 0x594   : > { %3500 = vmatprep.subr.mxu0 %v1767_v62 }
 0x595   : > { %3501 = vmatpush3.msra.mxu0 %v1767_v62 }
 0x596   : > { %3502 = vmatprep.subr.mxu0 %v1766_v63 }
 0x597   : > { %3503 = vmatpush3.msra.mxu0 %v1766_v63 }
 0x598   : > { %3504 = vmatprep.subr.mxu0 %v1765_v0 }
 0x599   : > { %3505 = vmatpush3.msra.mxu0 %v1765_v0 }
 0x59a   : > { %3506 = vmatprep.subr.mxu0 %v1764_v1 }
 0x59b   : > { %3507 = vmatpush3.msra.mxu0 %v1764_v1  ;;  %v3229_v1 = vld [vmem:[%s4467_s17] ss:$0 sm:$0xff] }
 0x59c   : > { %3508 = vmatprep.subr.mxu0 %v1763_v3 }
 0x59d   : > { %3509 = vmatpush3.msra.mxu0 %v1763_v3 }
 0x59e   : > { %3510 = vmatprep.subr.mxu0 %v1762_v4 }
 0x59f   : > { %3511 = vmatpush3.msra.mxu0 %v1762_v4 }
 0x5a0   : > { %3512 = vmatprep.subr.mxu0 %v1761_v5 }
 0x5a1   : > { %3513 = vmatpush3.msra.mxu0 %v1761_v5 }
 0x5a2   : > { %3514 = vmatprep.subr.mxu0 %v1760_v6 }
 0x5a3   : > { %3515 = vmatpush3.msra.mxu0 %v1760_v6 }
 0x5a4   : > { %3516 = vmatprep.subr.mxu0 %v1759_v7 }
 0x5a5   : > { %3517 = vmatpush3.msra.mxu0 %v1759_v7  ;;  %v3230_v7 = vld [vmem:[%s4468_s18] ss:$0 sm:$0xff] }
 0x64c   : > { %v3452_v9 = vpop.f32.mrf.mxu0 }
 0x64e   : > { %v3466_v10 = vpop.f32.mrf.mxu1  ;;  %v1220_v13 = vpop.f32.mrf.mxu0 }
 0x650   : > { %v1420_v11 = vpop.f32.mrf.mxu1 }
 0x651   : > { %3471 = vmatprep.mubr.msk.f32.mxu1 %vm1034_vm3, %v1420_v11  ;;  %v3225_v11 = vld [vmem:[%s4464_s14] ss:$0 sm:$0xff] }
 0x652   : > { %3472 = vmatmul.mubr.msk.f32.vlgmr.msra.gmra.mxu1 %vm1034_vm3, %v3466_v10  ;;  %v1756_v10 = vld [vmem:[%s4465_s15] sm:$0xff] }
 0x653   : > { %3475 = vmatpush3.msra.mxu1 %v1023_v8  ;;  %3478 = vmatprep.mubr.msk.f32.mxu1 %vm1034_vm3, %v1220_v13  ;;  %v1758_v8 = vld [vmem:[%s4465_s15 + $0x10] sm:$0xff] }
 0x654   : > { %3476 = vmatprep.subr.mxu1 %v1022_v12  ;;  %3518 = vmatprep.subr.mxu0 %v1758_v8 }
 0x655   : > { %3477 = vmatpush3.msra.mxu1 %v1022_v12  ;;  %3519 = vmatpush3.msra.mxu0 %v1758_v8 }
 0x656   : > { %3479 = vmatmul.mubr.msk.f32.vlgmr.msra.gmra.mxu1 %vm1034_vm3, %v3452_v9  ;;  %v1757_v9 = vld [vmem:[%s4465_s15 + $0x8] sm:$0xff] }
 0x657   : > { %3520 = vmatprep.subr.mxu0 %v1757_v9 }
 0x658   : > { %3521 = vmatpush3.msra.mxu0 %v1757_v9 }
 0x659   : > { %3522 = vmatprep.subr.mxu0 %v1756_v10 }
 0x65a   : > { %3523 = vmatpush3.msra.mxu0 %v1756_v10 }
 0x712   : > { %v3473_v14 = vpop.f32.mrf.mxu1 }
 0x714   : > { %v1501_v15 = vpop.f32.mrf.mxu1 }
 0x716   : > { %v3480_v16 = vpop.f32.mrf.mxu1 }
 0x717   : > { %v1588_v19 = vadd.f32 %v3480_v16, %v3473_v14 }
 0x718   : > { %v1582_v20 = vpop.f32.mrf.mxu1 }
 0x719   : > { %v1599_v22 = vadd.f32 %v3222_v18, %v1588_v19  ;;  %v1583_v23 = vadd.f32 %v1582_v20, %v1501_v15 }
 0x71b   : > { %v1598_v24 = vadd.f32 %v3222_v18, %v1583_v23  ;;  %v1601_v25 = vadd.f32 %v1599_v22, %v4026_v2 }
 0x71d   : > { %v1607_v26 = vsel %vm882_vm0, %v1601_v25, 0.0  ;;  %v1600_v27 = vadd.f32 %v1598_v24, %v4009_v50  ;;  %v1649_v50 = vld [vmem:[%s4463_s13 + $0x18] sm:$0xff] }
 0x71e   : > { %1608 = vadd.xlane.f32.xlu1 %v1607_v26  ;;  %3481 = vmatprep.subr.mxu1 %v1649_v50 }
 0x71f   : > { %v1604_v28 = vsel %vm882_vm0, %v1600_v27, 0.0  ;;  %3482 = vmatpush3.msra.mxu1 %v1649_v50 }
 0x720   : > { %1605 = vadd.xlane.f32.xlu0 %v1604_v28  ;;  %3483 = vmatprep.subr.mxu1 %v1648_v38 }
 0x721   : > { %3484 = vmatpush3.msra.mxu1 %v1648_v38 }
 0x722   : > { %3485 = vmatprep.subr.mxu1 %v1647_v39 }
 0x723   : > { %3486 = vmatpush3.msra.mxu1 %v1647_v39 }
 0x724   : > { %3487 = vmatprep.subr.mxu1 %v1646_v40 }
 0x725   : > { %3488 = vmatpush3.msra.mxu1 %v1646_v40 }
 0x7a7   : > { %v1609_v29 = vpop.xlane.xlu1 %1608 }
 0x7a8   : > { %v1611_v30 = vmul.f32 0.03125, %v1609_v29 }
 0x7a9   : > { %v1606_v31 = vpop.xlane.xlu0 %1605 }
 0x7aa   : > { %v1610_v32 = vmul.f32 0.03125, %v1606_v31  ;;  %v1613_v33 = vsub.f32 %v1601_v25, %v1611_v30 }
 0x7ac   : > { %v1612_v34 = vsub.f32 %v1600_v27, %v1610_v32  ;;  %v1615_v37 = vmul.f32 %v1613_v33, %v1613_v33 }
 0x7ae   : > { %v1614_v35 = vmul.f32 %v1612_v34, %v1612_v34  ;;  %v1619_v2 = vsel %vm882_vm0, %v1615_v37, 0.0 }
 0x7b0   : > { %v1616_v36 = vsel %vm882_vm0, %v1614_v35, 0.0 }
 0x7b1   : > { %1617 = vadd.xlane.f32.xlu0 %v1616_v36  ;;  %v3228_v36 = vld [vmem:[%s4466_s16] ss:$0 sm:$0xff] }
 0x7b5   : > { %1620 = vadd.xlane.f32.xlu0 %v1619_v2 }
 0x83a   : > { %v1618_v41 = vpop.xlane.xlu0 %1617 }
 0x83b   : > { %v1622_v42 = vmul.f32 0.03125, %v1618_v41 }
 0x83d   : > { %v1624_v43 = vadd.f32 1e-12, %v1622_v42 }
 0x83e   : > { %v1621_v44 = vpop.xlane.xlu0 %1620 }
 0x83f   : > { %3684 = vrsqrt.f32 %v1624_v43  ;;  %v1623_v45 = vmul.f32 0.03125, %v1621_v44 }
 0x841   : > { %v1625_v46 = vadd.f32 1e-12, %v1623_v45 }
 0x843   : > { %3686 = vrsqrt.f32 %v1625_v46 }
 0x84c   : > { %v3685_v47 = vpop.eup %3684 }
 0x84d   : > { %v1628_v49 = vmul.f32 %v3685_v47, %v1612_v34 }
 0x84f   : > { %v1636_v52 = vmul.f32 %v3223_v48, %v1628_v49 }
 0x850   : > { %v3687_v53 = vpop.eup %3686 }
 0x851   : > { %v1629_v54 = vmul.f32 %v3687_v53, %v1613_v33  ;;  %v4133_v55 = vadd.f32 %v3224_v51, %v1636_v52 }
 0x853   : > { %v1637_v56 = vmul.f32 %v3223_v48, %v1629_v54  ;;  %3489 = vmatprep.mubr.msk.f32.mxu1 %vm882_vm0, %v4133_v55  ;;  %v3234_v54 = vld [vmem:[%s4500_s3 + $0x38] sm:$0xff] }
 0x854   : > { %3527 = vmatprep.subr.mxu1 %v3234_v54 }
 0x855   : > { %v4137_v57 = vadd.f32 %v3224_v51, %v1637_v56  ;;  %v3232_v56 = vld [vmem:[%s4500_s3 + $0x28] sm:$0xff] }
 0x857   : > { %3490 = vmatmul.mubr.msk.f32.vlgmr.msra.gmra.mxu1 %vm882_vm0, %v4137_v57 }
 0x858   : > { %3528 = vmatpush3.msra.mxu1 %v3234_v54 }
 0x917   : > { %v3491_v12 = vpop.f32.mrf.mxu1 }
 0x918   : > { %v1735_v13 = vadd.f32 %v3491_v12, %v3225_v11 }
 0x919   : > { %v1729_v14 = vpop.f32.mrf.mxu1 }
 0x91a   : > { %v1739_v15 = vmul.f32 %v1735_v13, %v1735_v13  ;;  %v1730_v16 = vadd.f32 %v3225_v11, %v1729_v14  ;;  %v3236_v11 = vld [vmem:[%s4501_s2 + $0x1] ss:$0 sm:$0xff] }
 0x91c   : > { %v1741_v18 = vmul.f32 %v1739_v15, %v1735_v13  ;;  %v1738_v19 = vmul.f32 %v1730_v16, %v1730_v16 }
 0x91e   : > { %v1743_v20 = vmul.f32 0.044715, %v1741_v18  ;;  %v1740_v22 = vmul.f32 %v1738_v19, %v1730_v16 }
 0x920   : > { %v1745_v23 = vadd.f32 %v1743_v20, %v1735_v13  ;;  %v1742_v24 = vmul.f32 0.044715, %v1740_v22 }
 0x922   : > { %v1747_v25 = vmul.f32 0.7978846, %v1745_v23  ;;  %v1744_v26 = vadd.f32 %v1742_v24, %v1730_v16 }
 0x924   : > { %3688 = vtanh.f32 %v1747_v25  ;;  %v1746_v27 = vmul.f32 0.7978846, %v1744_v26 }
 0x926   : > { %3690 = vtanh.f32 %v1746_v27 }
 0x931   : > { %v3689_v28 = vpop.eup %3688 }
 0x932   : > { %v1751_v29 = vadd.f32 1.0, %v3689_v28 }
 0x933   : > { %v3691_v30 = vpop.eup %3690 }
 0x934   : > { %v1750_v31 = vadd.f32 1.0, %v3691_v30  ;;  %v1753_v32 = vmul.f32 0.5, %v1751_v29 }
 0x936   : > { %v1752_v33 = vmul.f32 0.5, %v1750_v31  ;;  %v1755_v35 = vmul.f32 %v1753_v32, %v1735_v13 }
 0x938   : > { %v1754_v34 = vmul.f32 %v1752_v33, %v1730_v16 }
 0x93a   : > { %3524 = vmatprep.mubr.f32.mxu0 %v1754_v34 }
 0x93b   : > { %3525 = vmatmul.mubr.f32.vlgmr.msra.gmra.mxu0 %v1755_v35 }
 0x9fb   : > { %v3526_v37 = vpop.f32.mrf.mxu0 }
 0x9fc   : > { %v1851_v2 = vadd.f32 %v3526_v37, %v3228_v36 }
 0x9fd   : > { %v1845_v50 = vpop.f32.mrf.mxu0 }
 0x9fe   : > { %v1846_v38 = vadd.f32 %v3228_v36, %v1845_v50  ;;  %v1855_v39 = vadd.f32 %v1851_v2, %v4137_v57  ;;  %v3231_v57 = vld [vmem:[%s4500_s3 + $0x20] sm:$0xff] }
 0xa00   : > { %v1861_v40 = vsel %vm882_vm0, %v1855_v39, 0.0  ;;  %v1854_v41 = vadd.f32 %v1846_v38, %v4133_v55  ;;  %v3233_v55 = vld [vmem:[%s4500_s3 + $0x30] sm:$0xff] }
 0xa01   : > { %1862 = vadd.xlane.f32.xlu1 %v1861_v40  ;;  %3529 = vmatprep.subr.mxu1 %v3233_v55 }
 0xa02   : > { %v1858_v42 = vsel %vm882_vm0, %v1854_v41, 0.0  ;;  %3530 = vmatpush3.msra.mxu1 %v3233_v55 }
 0xa03   : > { %1859 = vadd.xlane.f32.xlu0 %v1858_v42  ;;  %3531 = vmatprep.subr.mxu1 %v3232_v56 }
 0xa04   : > { %3532 = vmatpush3.msra.mxu1 %v3232_v56 }
 0xa05   : > { %3533 = vmatprep.subr.mxu1 %v3231_v57 }
 0xa06   : > { %3534 = vmatpush3.msra.mxu1 %v3231_v57 }
 0xa8a   : > { %v1863_v43 = vpop.xlane.xlu1 %1862 }
 0xa8b   : > { %v1865_v44 = vmul.f32 0.03125, %v1863_v43 }
 0xa8c   : > { %v1860_v45 = vpop.xlane.xlu0 %1859 }
 0xa8d   : > { %v1867_v46 = vsub.f32 %v1855_v39, %v1865_v44  ;;  %v1864_v47 = vmul.f32 0.03125, %v1860_v45 }
 0xa8f   : > { %v1866_v48 = vsub.f32 %v1854_v41, %v1864_v47  ;;  %v1869_v49 = vmul.f32 %v1867_v46, %v1867_v46 }
 0xa91   : > { %v1873_v51 = vsel %vm882_vm0, %v1869_v49, 0.0  ;;  %v1868_v52 = vmul.f32 %v1866_v48, %v1866_v48 }
 0xa92   : > { %1874 = vadd.xlane.f32.xlu1 %v1873_v51 }
 0xa93   : > { %v1870_v53 = vsel %vm882_vm0, %v1868_v52, 0.0 }
 0xa94   : > { %1871 = vadd.xlane.f32.xlu0 %v1870_v53 }
 0xb1b   : > { %v1875_v58 = vpop.xlane.xlu1 %1874 }
 0xb1c   : > { %v1877_v59 = vmul.f32 0.03125, %v1875_v58 }
 0xb1d   : > { %v1872_v60 = vpop.xlane.xlu0 %1871 }
 0xb1e   : > { %v1879_v61 = vadd.f32 1e-12, %v1877_v59  ;;  %v1876_v62 = vmul.f32 0.03125, %v1872_v60 }
 0xb20   : > { %3692 = vrsqrt.f32 %v1879_v61  ;;  %v1878_v63 = vadd.f32 1e-12, %v1876_v62 }
 0xb22   : > { %3694 = vrsqrt.f32 %v1878_v63 }
 0xb2d   : > { %v3693_v0 = vpop.eup %3692 }
 0xb2e   : > { %v1883_v3 = vmul.f32 %v3693_v0, %v1867_v46 }
 0xb2f   : > { %v3695_v4 = vpop.eup %3694 }
 0xb30   : > { %v1882_v5 = vmul.f32 %v3695_v4, %v1866_v48  ;;  %v1891_v6 = vmul.f32 %v3229_v1, %v1883_v3  ;;  %v3242_v3 = vld [vmem:[%s4459_s9 + $0x38] sm:$0xff] }
 0xb31   : > { %3566 = vmatprep.subr.mxu0 %v3242_v3 }
 0xb32   : > { %v1890_v8 = vmul.f32 %v3229_v1, %v1882_v5  ;;  %v4221_v10 = vadd.f32 %v3230_v7, %v1891_v6  ;;  %3567 = vmatpush3.msra.mxu0 %v3242_v3  ;;  %v3282_v3 = vld [vmem:[%s4465_s15 + $0xc8] sm:$0xff] }
 0xb34   : > { %v4219_v9 = vadd.f32 %v3230_v7, %v1890_v8  ;;  %v3240_v8 = vld [vmem:[%s4459_s9 + $0x28] sm:$0xff] }
 0xb36   : > { %3535 = vmatprep.mubr.msk.f32.mxu1 %vm882_vm0, %v4219_v9 }
 0xb37   : > { %3536 = vmatmul.mubr.msk.f32.vlgmr.msra.gmra.mxu1 %vm882_vm0, %v4221_v10 }
 0xbf7   : > { %v3537_v12 = vpop.f32.mrf.mxu1 }
 0xbf8   : > { %v4230_v13 = vadd.f32 %v3537_v12, %v3236_v11 }
 0xbf9   : > { %v1985_v14 = vpop.f32.mrf.mxu1 }
 0xbfa   : > { %v4232_v15 = vadd.f32 %v3236_v11, %v1985_v14  ;;  %2005 = vrot.lane.b32.xlu0 %v4230_v13, %s3741_s29  ;;  %v2000_v20 = vmul.f32 0.25, %v4230_v13 }
 0xbfc   : > { %2003 = vrot.lane.b32.xlu1 %v4232_v15, %s3741_s29  ;;  %v1999_v16 = vmul.f32 0.25, %v4232_v15  ;;  %s4502_s29 = smov 112  }
 0xbfe   : > { %3542 = vmatprep.mubr.msk.f32.mxu1 %vm1034_vm3, %v1999_v16 }
 0xc6c   : > { %v2006_v18 = vpop.permute.xlu0 %2005 }
 0xc6d   : > { %3538 = vmatprep.subr.msk.mxu1 %vm1034_vm3, %v2006_v18 }
 0xc6e   : > { %3539 = vmatpush3.xpose.msk.msra.mxu1 %vm1034_vm3, %v2006_v18  ;;  %v2004_v19 = vpop.permute.xlu1 %2003 }
 0xc6f   : > { %3540 = vmatprep.subr.msk.mxu1 %vm1034_vm3, %v2004_v19 }
 0xc72   : > { %3541 = vmatpush3.xpose.msk.msra.mxu1 %vm1034_vm3, %v2004_v19 }
 0xc75   : > { %3543 = vmatmul.mubr.msk.f32.vlgmr.msra.gmra.mxu1 %vm1034_vm3, %v2000_v20 }
 0xd35   : > { %v3544_v22 = vpop.f32.mrf.mxu1 }
 0xd36   : > { %v2089_v23 = vadd.f32 %v3544_v22, %v4064_v21 }
 0xd37   : > { %v2083_v24 = vpop.f32.mrf.mxu1 }
 0xd38   : > { %v2084_v25 = vadd.f32 %v2083_v24, %v4064_v21  ;;  %v2095_v26 = vsel %vm1034_vm3, %v2089_v23, -inf }
 0xd39   : > { %2096 = vmax.xlane.f32.xlu0 %v2095_v26 }
 0xd3a   : > { %v2092_v27 = vsel %vm1034_vm3, %v2084_v25, -inf }
 0xd3b   : > { %2093 = vmax.xlane.f32.xlu1 %v2092_v27 }
 0xdc2   : > { %v2097_v28 = vpop.xlane.xlu0 %2096 }
 0xdc3   : > { %v2099_v29 = vsub.f32 %v2089_v23, %v2097_v28  ;;  %v3260_v23 = vld [vmem:[%s4460_s10 + $0x1] ss:$0 sm:$0xff] }
 0xdc4   : > { %v2094_v30 = vpop.xlane.xlu1 %2093 }
 0xdc5   : > { %v2102_v31 = vmul.f32 1.442695, %v2099_v29  ;;  %v2098_v32 = vsub.f32 %v2084_v25, %v2094_v30 }
 0xdc7   : > { %3696 = vpow2.f32 %v2102_v31  ;;  %v2100_v33 = vmul.f32 1.442695, %v2098_v32 }
 0xdc9   : > { %3698 = vpow2.f32 %v2100_v33 }
 0xdd4   : > { %v3697_v34 = vpop.eup %3696 }
 0xdd5   : > { %v2107_v35 = vsel %vm1034_vm3, %v3697_v34, 0.0 }
 0xdd6   : > { %v3699_v36 = vpop.eup %3698  ;;  %2108 = vadd.xlane.f32.xlu1 %v2107_v35 }
 0xdd7   : > { %v2104_v37 = vsel %vm1034_vm3, %v3699_v36, 0.0 }
 0xdd8   : > { %2105 = vadd.xlane.f32.xlu0 %v2104_v37 }
 0xde7   : > { %2114 = vrot.lane.b32.xlu1 %v4232_v15, %s3746_s30 }
 0xdeb   : > { %2207 = vrot.lane.b32.xlu1 %v4230_v13, %s3743_s7 }
 0xdee   : > { %2116 = vrot.lane.b32.xlu0 %v4230_v13, %s3746_s30 }
 0xdef   : > { %2205 = vrot.lane.b32.xlu1 %v4232_v15, %s3743_s7  ;;  %s4503_s7 = smov 48  }
 0xdf2   : > { %2201 = vrot.lane.b32.xlu0 %v1999_v16, %s4502_s29  ;;  %v3241_v16 = vld [vmem:[%s4459_s9 + $0x30] sm:$0xff] }
 0xdf3   : > { %2203 = vrot.lane.b32.xlu1 %v2000_v20, %s4502_s29  ;;  %3568 = vmatprep.subr.mxu0 %v3241_v16 }
 0xdf4   : > { %3569 = vmatpush3.msra.mxu0 %v3241_v16 }
 0xe5f   : > { %v2109_v2 = vpop.xlane.xlu1 %2108 }
 0xe60   : > { %3700 = vrcp.f32 %v2109_v2 }
 0xe61   : > { %v2106_v50 = vpop.xlane.xlu0 %2105 }
 0xe62   : > { %3702 = vrcp.f32 %v2106_v50 }
 0xe63   : > { %v2115_v38 = vpop.permute.xlu1 %2114 }
 0xe65   : > { %v2117_v39 = vpop.permute.xlu0 %2116 }
 0xe66   : > { %3545 = vmatprep.subr.mxu1 %v2117_v39 }
 0xe67   : > { %3546 = vmatpush3.msra.mxu1 %v2117_v39  ;;  %v2208_v40 = vpop.permute.xlu1 %2207 }
 0xe68   : > { %3547 = vmatprep.subr.mxu1 %v2115_v38 }
 0xe69   : > { %3548 = vmatpush3.msra.mxu1 %v2115_v38  ;;  %v2202_v45 = vpop.permute.xlu0 %2201 }
 0xe6a   : > { %3552 = vmatprep.subr.msk.mxu1 %vm1034_vm3, %v2208_v40 }
 0xe6b   : > { %v2206_v46 = vpop.permute.xlu1 %2205 }
 0xe6d   : > { %v3701_v41 = vpop.eup %3700 }
 0xe6e   : > { %v2113_v44 = vmul.f32 %v3701_v41, %v3697_v34  ;;  %v3267_v41 = vld [vmem:[%s4463_s13 + $0x30] sm:$0xff] }
 0xe6f   : > { %v3703_v42 = vpop.eup %3702  ;;  %v2204_v47 = vpop.permute.xlu1 %2203 }
 0xe70   : > { %v2112_v43 = vmul.f32 %v3703_v42, %v3699_v36  ;;  %v3266_v42 = vld [vmem:[%s4463_s13 + $0x28] sm:$0xff] }
 0xe72   : > { %3549 = vmatprep.mubr.msk.f32.mxu1 %vm1034_vm3, %v2112_v43  ;;  %v3265_v43 = vld [vmem:[%s4463_s13 + $0x20] sm:$0xff] }
 0xe73   : > { %3550 = vmatmul.mubr.msk.f32.vlgmr.msra.gmra.mxu1 %vm1034_vm3, %v2113_v44 }
 0xe74   : > { %3553 = vmatpush3.xpose.msk.msra.mxu1 %vm1034_vm3, %v2208_v40  ;;  %3556 = vmatprep.mubr.msk.f32.mxu1 %vm1034_vm3, %v2202_v45 }
 0xe75   : > { %3554 = vmatprep.subr.msk.mxu1 %vm1034_vm3, %v2206_v46 }
 0xe78   : > { %3555 = vmatpush3.xpose.msk.msra.mxu1 %vm1034_vm3, %v2206_v46 }
 0xe7b   : > { %3557 = vmatmul.mubr.msk.f32.vlgmr.msra.gmra.mxu1 %vm1034_vm3, %v2204_v47 }
 0xf33   : > { %v3551_v48 = vpop.f32.mrf.mxu1 }
 0xf35   : > { %v2192_v49 = vpop.f32.mrf.mxu1 }
 0xf3b   : > { %v3558_v51 = vpop.f32.mrf.mxu1 }
 0xf3c   : > { %v2289_v52 = vadd.f32 %v3558_v51, %v4064_v21 }
 0xf3d   : > { %v2283_v53 = vpop.f32.mrf.mxu1 }
 0xf3e   : > { %v2284_v54 = vadd.f32 %v2283_v53, %v4064_v21  ;;  %v2295_v55 = vsel %vm1034_vm3, %v2289_v52, -inf }
 0xf3f   : > { %2296 = vmax.xlane.f32.xlu1 %v2295_v55 }
 0xf40   : > { %v2292_v56 = vsel %vm1034_vm3, %v2284_v54, -inf }
 0xf41   : > { %2293 = vmax.xlane.f32.xlu0 %v2292_v56 }
 0xf50   : > { %2314 = vrot.lane.b32.xlu1 %v4232_v15, %s4503_s7  ;;  %v3239_v15 = vld [vmem:[%s4459_s9 + $0x20] sm:$0xff] }
 0xfc8   : > { %v2297_v57 = vpop.xlane.xlu1 %2296 }
 0xfc9   : > { %v2299_v58 = vsub.f32 %v2289_v52, %v2297_v57  ;;  %v3263_v52 = vld [vmem:[%s4461_s11 + $0x1] ss:$0 sm:$0xff] }
 0xfca   : > { %v2294_v59 = vpop.xlane.xlu0 %2293  ;;  %v3264_v57 = vld [vmem:[%s4462_s12 + $0x1] ss:$0 sm:$0xff] }
 0xfcb   : > { %v2302_v60 = vmul.f32 1.442695, %v2299_v58  ;;  %v2298_v61 = vsub.f32 %v2284_v54, %v2294_v59 }
 0xfcc   : > { %v2315_v7 = vpop.permute.xlu1 %2314 }
 0xfcd   : > { %3704 = vpow2.f32 %v2302_v60  ;;  %v2300_v62 = vmul.f32 1.442695, %v2298_v61  ;;  %v3288_v61 = vld [vmem:[%s4465_s15 + $0xf8] sm:$0xff] }
 0xfcf   : > { %3706 = vpow2.f32 %v2300_v62  ;;  %v3287_v62 = vld [vmem:[%s4465_s15 + $0xf0] sm:$0xff] }
 0xfda   : > { %v3705_v63 = vpop.eup %3704 }
 0xfdb   : > { %v2307_v21 = vsel %vm1034_vm3, %v3705_v63, 0.0 }
 0xfdc   : > { %v3707_v0 = vpop.eup %3706  ;;  %2308 = vadd.xlane.f32.xlu0 %v2307_v21  ;;  %v3285_v21 = vld [vmem:[%s4465_s15 + $0xe0] sm:$0xff] }
 0xfdd   : > { %v2304_v1 = vsel %vm1034_vm3, %v3707_v0, 0.0 }
 0xfe0   : > { %2305 = vadd.xlane.f32.xlu0 %v2304_v1  ;;  %v3283_v1 = vld [vmem:[%s4465_s15 + $0xd0] sm:$0xff] }
 0xff6   : > { %2316 = vrot.lane.b32.xlu0 %v4230_v13, %s4503_s7 }
0x1065   : > { %v2309_v4 = vpop.xlane.xlu0 %2308 }
0x1066   : > { %3708 = vrcp.f32 %v2309_v4  ;;  %v3281_v4 = vld [vmem:[%s4465_s15 + $0xc0] sm:$0xff] }
0x1069   : > { %v2306_v5 = vpop.xlane.xlu0 %2305 }
0x106a   : > { %3710 = vrcp.f32 %v2306_v5  ;;  %v3280_v5 = vld [vmem:[%s4465_s15 + $0xb8] sm:$0xff] }
0x106d   : > { %v2317_v6 = vpop.permute.xlu0 %2316 }
0x106e   : > { %3559 = vmatprep.subr.mxu1 %v2317_v6 }
0x106f   : > { %3560 = vmatpush3.msra.mxu1 %v2317_v6  ;;  %v3279_v6 = vld [vmem:[%s4465_s15 + $0xb0] sm:$0xff] }
0x1070   : > { %3561 = vmatprep.subr.mxu1 %v2315_v7 }
0x1071   : > { %3562 = vmatpush3.msra.mxu1 %v2315_v7  ;;  %v3278_v7 = vld [vmem:[%s4465_s15 + $0xa8] sm:$0xff] }
0x1072   : > { %3573 = vmatprep.subr.mxu1 %v3240_v8 }
0x1073   : > { %v3709_v11 = vpop.eup %3708 }
0x1074   : > { %v2313_v14 = vmul.f32 %v3709_v11, %v3705_v63  ;;  %v3286_v63 = vld [vmem:[%s4465_s15 + $0xe8] sm:$0xff]  ;;  %v3276_v11 = vld [vmem:[%s4465_s15 + $0x98] sm:$0xff] }
0x1077   : > { %v3711_v12 = vpop.eup %3710 }
0x1078   : > { %v2312_v13 = vmul.f32 %v3711_v12, %v3707_v0  ;;  %v3284_v0 = vld [vmem:[%s4465_s15 + $0xd8] sm:$0xff]  ;;  %v3275_v12 = vld [vmem:[%s4465_s15 + $0x90] sm:$0xff] }
0x107a   : > { %3563 = vmatprep.mubr.msk.f32.mxu1 %vm1034_vm3, %v2312_v13  ;;  %v3274_v13 = vld [vmem:[%s4465_s15 + $0x88] sm:$0xff] }
0x107b   : > { %3564 = vmatmul.mubr.msk.f32.vlgmr.msra.gmra.mxu1 %vm1034_vm3, %v2313_v14  ;;  %v3273_v14 = vld [vmem:[%s4465_s15 + $0x80] sm:$0xff] }
0x107c   : > { %3574 = vmatpush3.msra.mxu1 %v3240_v8  ;;  %3577 = vmatprep.mubr.msk.f32.mxu1 %vm1034_vm3, %v2192_v49  ;;  %v3277_v8 = vld [vmem:[%s4465_s15 + $0xa0] sm:$0xff] }
0x107d   : > { %3575 = vmatprep.subr.mxu1 %v3239_v15 }
0x107e   : > { %3576 = vmatpush3.msra.mxu1 %v3239_v15  ;;  %v3270_v15 = vld [vmem:[%s4464_s14 + $0x1] ss:$0 sm:$0xff] }
0x107f   : > { %3578 = vmatmul.mubr.msk.f32.vlgmr.msra.gmra.mxu1 %vm1034_vm3, %v3551_v48  ;;  %3591 = vmatprep.subr.mxu1 %v3288_v61 }
0x1080   : > { %3592 = vmatpush3.msra.mxu1 %v3288_v61 }
0x1081   : > { %3593 = vmatprep.subr.mxu1 %v3287_v62 }
0x1082   : > { %3594 = vmatpush3.msra.mxu1 %v3287_v62 }
0x1083   : > { %3595 = vmatprep.subr.mxu1 %v3286_v63 }
0x1084   : > { %3596 = vmatpush3.msra.mxu1 %v3286_v63 }
0x1085   : > { %3597 = vmatprep.subr.mxu1 %v3285_v21 }
0x1086   : > { %3598 = vmatpush3.msra.mxu1 %v3285_v21 }
0x1087   : > { %3599 = vmatprep.subr.mxu1 %v3284_v0 }
0x1088   : > { %3600 = vmatpush3.msra.mxu1 %v3284_v0 }
0x1089   : > { %3601 = vmatprep.subr.mxu1 %v3283_v1 }
0x108a   : > { %3602 = vmatpush3.msra.mxu1 %v3283_v1 }
0x108b   : > { %3603 = vmatprep.subr.mxu1 %v3282_v3 }
0x108c   : > { %3604 = vmatpush3.msra.mxu1 %v3282_v3  ;;  %v3293_v3 = vld [vmem:[%s4467_s17 + $0x1] ss:$0 sm:$0xff] }
0x108d   : > { %3605 = vmatprep.subr.mxu1 %v3281_v4 }
0x108e   : > { %3606 = vmatpush3.msra.mxu1 %v3281_v4 }
0x108f   : > { %3607 = vmatprep.subr.mxu1 %v3280_v5 }
0x1090   : > { %3608 = vmatpush3.msra.mxu1 %v3280_v5 }
0x1091   : > { %3609 = vmatprep.subr.mxu1 %v3279_v6 }
0x1092   : > { %3610 = vmatpush3.msra.mxu1 %v3279_v6  ;;  %v3294_v6 = vld [vmem:[%s4468_s18 + $0x1] ss:$0 sm:$0xff] }
0x1093   : > { %3611 = vmatprep.subr.mxu1 %v3278_v7 }
0x1094   : > { %3612 = vmatpush3.msra.mxu1 %v3278_v7 }
0x1095   : > { %3613 = vmatprep.subr.mxu1 %v3277_v8 }
0x1096   : > { %3614 = vmatpush3.msra.mxu1 %v3277_v8 }
0x1097   : > { %3615 = vmatprep.subr.mxu1 %v3276_v11 }
0x1098   : > { %3616 = vmatpush3.msra.mxu1 %v3276_v11 }
0x1099   : > { %3617 = vmatprep.subr.mxu1 %v3275_v12 }
0x109a   : > { %3618 = vmatpush3.msra.mxu1 %v3275_v12 }
0x109b   : > { %3619 = vmatprep.subr.mxu1 %v3274_v13 }
0x109c   : > { %3620 = vmatpush3.msra.mxu1 %v3274_v13 }
0x109d   : > { %3621 = vmatprep.subr.mxu1 %v3273_v14 }
0x109e   : > { %3622 = vmatpush3.msra.mxu1 %v3273_v14  ;;  %v2980_v14 = vld [vmem:[%s4471_s21 + $0x18] sm:$0xff] }
0x113b   : > { %v3565_v18 = vpop.f32.mrf.mxu1 }
0x113d   : > { %v2392_v19 = vpop.f32.mrf.mxu1 }
0x113e   : > { %3570 = vmatprep.mubr.msk.f32.mxu0 %vm1034_vm3, %v2392_v19 }
0x113f   : > { %3571 = vmatmul.mubr.msk.f32.vlgmr.msra.gmra.mxu0 %vm1034_vm3, %v3565_v18  ;;  %v3579_v20 = vpop.f32.mrf.mxu1 }
0x1141   : > { %v2554_v25 = vpop.f32.mrf.mxu1 }
0x11ff   : > { %v3572_v22 = vpop.f32.mrf.mxu0 }
0x1200   : > { %v2560_v24 = vadd.f32 %v3579_v20, %v3572_v22 }
0x1201   : > { %v2473_v26 = vpop.f32.mrf.mxu0 }
0x1202   : > { %v2572_v27 = vadd.f32 %v3260_v23, %v2560_v24  ;;  %v2555_v28 = vadd.f32 %v2554_v25, %v2473_v26 }
0x1204   : > { %v2571_v29 = vadd.f32 %v3260_v23, %v2555_v28  ;;  %v2574_v30 = vadd.f32 %v2572_v27, %v4221_v10 }
0x1206   : > { %v2582_v31 = vsel %vm882_vm0, %v2574_v30, 0.0  ;;  %v2573_v32 = vadd.f32 %v2571_v29, %v4219_v9  ;;  %v3268_v9 = vld [vmem:[%s4463_s13 + $0x38] sm:$0xff] }
0x1207   : > { %2583 = vadd.xlane.f32.xlu0 %v2582_v31  ;;  %3580 = vmatprep.subr.mxu0 %v3268_v9 }
0x1208   : > { %v2579_v33 = vsel %vm882_vm0, %v2573_v32, 0.0  ;;  %3581 = vmatpush3.msra.mxu0 %v3268_v9 }
0x1209   : > { %2580 = vadd.xlane.f32.xlu1 %v2579_v33  ;;  %3582 = vmatprep.subr.mxu0 %v3267_v41 }
0x120a   : > { %3583 = vmatpush3.msra.mxu0 %v3267_v41 }
0x120b   : > { %3584 = vmatprep.subr.mxu0 %v3266_v42 }
0x120c   : > { %3585 = vmatpush3.msra.mxu0 %v3266_v42 }
0x120d   : > { %3586 = vmatprep.subr.mxu0 %v3265_v43 }
0x120e   : > { %3587 = vmatpush3.msra.mxu0 %v3265_v43 }
0x1290   : > { %v2584_v34 = vpop.xlane.xlu0 %2583 }
0x1291   : > { %v2586_v35 = vmul.f32 0.03125, %v2584_v34 }
0x1292   : > { %v2581_v36 = vpop.xlane.xlu1 %2580 }
0x1293   : > { %v2588_v37 = vsub.f32 %v2574_v30, %v2586_v35  ;;  %v2585_v2 = vmul.f32 0.03125, %v2581_v36 }
0x1295   : > { %v2587_v50 = vsub.f32 %v2573_v32, %v2585_v2  ;;  %v2590_v38 = vmul.f32 %v2588_v37, %v2588_v37 }
0x1297   : > { %v2594_v39 = vsel %vm882_vm0, %v2590_v38, 0.0  ;;  %v2589_v40 = vmul.f32 %v2587_v50, %v2587_v50  ;;  %v3290_v38 = vld [vmem:[%s4466_s16 + $0x1] ss:$0 sm:$0xff] }
0x1298   : > { %2595 = vadd.xlane.f32.xlu1 %v2594_v39 }
0x1299   : > { %v2591_v10 = vsel %vm882_vm0, %v2589_v40, 0.0 }
0x129a   : > { %2592 = vadd.xlane.f32.xlu0 %v2591_v10 }
0x1321   : > { %v2596_v44 = vpop.xlane.xlu1 %2595 }
0x1322   : > { %v2598_v45 = vmul.f32 0.03125, %v2596_v44 }
0x1323   : > { %v2593_v46 = vpop.xlane.xlu0 %2592 }
0x1324   : > { %v2600_v47 = vadd.f32 1e-12, %v2598_v45  ;;  %v2597_v48 = vmul.f32 0.03125, %v2593_v46 }
0x1326   : > { %3712 = vrsqrt.f32 %v2600_v47  ;;  %v2599_v49 = vadd.f32 1e-12, %v2597_v48 }
0x1328   : > { %3714 = vrsqrt.f32 %v2599_v49 }
0x1333   : > { %v3713_v51 = vpop.eup %3712 }
0x1334   : > { %v2604_v53 = vmul.f32 %v3713_v51, %v2588_v37 }
0x1335   : > { %v3715_v54 = vpop.eup %3714 }
0x1336   : > { %v2603_v55 = vmul.f32 %v3715_v54, %v2587_v50  ;;  %v2612_v56 = vmul.f32 %v3263_v52, %v2604_v53 }
0x1338   : > { %v2611_v58 = vmul.f32 %v3263_v52, %v2603_v55  ;;  %v4327_v60 = vadd.f32 %v3264_v57, %v2612_v56  ;;  %v2886_v56 = vld [vmem:[%s4469_s19 + $0x18] sm:$0xff] }
0x1339   : > { %3626 = vmatprep.subr.mxu0 %v2886_v56 }
0x133a   : > { %v4325_v59 = vadd.f32 %v3264_v57, %v2611_v58  ;;  %v2885_v57 = vld [vmem:[%s4469_s19 + $0x10] sm:$0xff]  ;;  %v2884_v58 = vld [vmem:[%s4469_s19 + $0x8] sm:$0xff] }
0x133c   : > { %3588 = vmatprep.mubr.msk.f32.mxu0 %vm882_vm0, %v4325_v59 }
0x133d   : > { %3589 = vmatmul.mubr.msk.f32.vlgmr.msra.gmra.mxu0 %vm882_vm0, %v4327_v60 }
0x133e   : > { %3627 = vmatpush3.msra.mxu0 %v2886_v56 }
0x133f   : > { %3628 = vmatprep.subr.mxu0 %v2885_v57 }
0x1340   : > { %3629 = vmatpush3.msra.mxu0 %v2885_v57 }
0x1341   : > { %3630 = vmatprep.subr.mxu0 %v2884_v58 }
0x1342   : > { %3631 = vmatpush3.msra.mxu0 %v2884_v58 }
0x13fd   : > { %v3590_v16 = vpop.f32.mrf.mxu0 }
0x13fe   : > { %v2712_v18 = vadd.f32 %v3590_v16, %v3270_v15  ;;  %v2978_v16 = vld [vmem:[%s4471_s21 + $0x8] sm:$0xff] }
0x13ff   : > { %v2706_v19 = vpop.f32.mrf.mxu0 }
0x1400   : > { %v2716_v20 = vmul.f32 %v2712_v18, %v2712_v18  ;;  %v2707_v22 = vadd.f32 %v3270_v15, %v2706_v19  ;;  %v2979_v15 = vld [vmem:[%s4471_s21 + $0x10] sm:$0xff]  ;;  %v3295_v19 = vld [vmem:[%s4470_s20] ss:$0 sm:$0xff] }
0x1402   : > { %v2718_v23 = vmul.f32 %v2716_v20, %v2712_v18  ;;  %v2715_v24 = vmul.f32 %v2707_v22, %v2707_v22 }
0x1404   : > { %v2720_v25 = vmul.f32 0.044715, %v2718_v23  ;;  %v2717_v26 = vmul.f32 %v2715_v24, %v2707_v22 }
0x1406   : > { %v2722_v27 = vadd.f32 %v2720_v25, %v2712_v18  ;;  %v2719_v28 = vmul.f32 0.044715, %v2717_v26 }
0x1408   : > { %v2724_v29 = vmul.f32 0.7978846, %v2722_v27  ;;  %v2721_v30 = vadd.f32 %v2719_v28, %v2707_v22  ;;  %v3298_v27 = vld [vmem:[%s4472_s22] ss:$0 sm:$0xff] }
0x140a   : > { %3716 = vtanh.f32 %v2724_v29  ;;  %v2723_v31 = vmul.f32 0.7978846, %v2721_v30 }
0x140c   : > { %3718 = vtanh.f32 %v2723_v31 }
0x1417   : > { %v3717_v32 = vpop.eup %3716 }
0x1418   : > { %v2728_v33 = vadd.f32 1.0, %v3717_v32 }
0x1419   : > { %v3719_v34 = vpop.eup %3718 }
0x141a   : > { %v2727_v35 = vadd.f32 1.0, %v3719_v34  ;;  %v2730_v36 = vmul.f32 0.5, %v2728_v33 }
0x141c   : > { %v2729_v37 = vmul.f32 0.5, %v2727_v35  ;;  %v2732_v50 = vmul.f32 %v2730_v36, %v2712_v18  ;;  %v2977_v18 = vld [vmem:[%s4471_s21] sm:$0xff] }
0x141e   : > { %v2731_v2 = vmul.f32 %v2729_v37, %v2707_v22 }
0x1420   : > { %3623 = vmatprep.mubr.f32.mxu1 %v2731_v2 }
0x1421   : > { %3624 = vmatmul.mubr.f32.vlgmr.msra.gmra.mxu1 %v2732_v50 }
0x14e1   : > { %v3625_v39 = vpop.f32.mrf.mxu1 }
0x14e2   : > { %v2830_v40 = vadd.f32 %v3625_v39, %v3290_v38 }
0x14e3   : > { %v2824_v10 = vpop.f32.mrf.mxu1 }
0x14e4   : > { %v2825_v9 = vadd.f32 %v3290_v38, %v2824_v10  ;;  %v2834_v41 = vadd.f32 %v2830_v40, %v4327_v60 }
0x14e6   : > { %v2842_v42 = vsel %vm882_vm0, %v2834_v41, 0.0  ;;  %v2833_v43 = vadd.f32 %v2825_v9, %v4325_v59  ;;  %v2883_v59 = vld [vmem:[%s4469_s19] sm:$0xff] }
0x14e7   : > { %2843 = vadd.xlane.f32.xlu1 %v2842_v42  ;;  %3632 = vmatprep.subr.mxu0 %v2883_v59 }
0x14e8   : > { %v2839_v44 = vsel %vm882_vm0, %v2833_v43, 0.0  ;;  %3633 = vmatpush3.msra.mxu0 %v2883_v59 }
0x14e9   : > { %2840 = vadd.xlane.f32.xlu0 %v2839_v44  ;;  %3637 = vmatprep.subr.mxu0 %v2980_v14 }
0x1570   : > { %v2844_v45 = vpop.xlane.xlu1 %2843 }
0x1571   : > { %v2846_v46 = vmul.f32 0.03125, %v2844_v45 }
0x1572   : > { %v2841_v47 = vpop.xlane.xlu0 %2840 }
0x1573   : > { %v2848_v48 = vsub.f32 %v2834_v41, %v2846_v46  ;;  %v2845_v49 = vmul.f32 0.03125, %v2841_v47 }
0x1575   : > { %v2847_v51 = vsub.f32 %v2833_v43, %v2845_v49  ;;  %v2850_v52 = vmul.f32 %v2848_v48, %v2848_v48 }
0x1577   : > { %v2854_v53 = vsel %vm882_vm0, %v2850_v52, 0.0  ;;  %v2849_v54 = vmul.f32 %v2847_v51, %v2847_v51 }
0x1578   : > { %2855 = vadd.xlane.f32.xlu1 %v2854_v53 }
0x1579   : > { %v2851_v55 = vsel %vm882_vm0, %v2849_v54, 0.0 }
0x157a   : > { %2852 = vadd.xlane.f32.xlu0 %v2851_v55 }
0x1601   : > { %v2856_v60 = vpop.xlane.xlu1 %2855 }
0x1602   : > { %v2858_v61 = vmul.f32 0.03125, %v2856_v60 }
0x1603   : > { %v2853_v62 = vpop.xlane.xlu0 %2852 }
0x1604   : > { %v2860_v63 = vadd.f32 1e-12, %v2858_v61  ;;  %v2857_v21 = vmul.f32 0.03125, %v2853_v62 }
0x1606   : > { %3720 = vrsqrt.f32 %v2860_v63  ;;  %v2859_v0 = vadd.f32 1e-12, %v2857_v21 }
0x1608   : > { %3722 = vrsqrt.f32 %v2859_v0 }
0x1613   : > { %v3721_v1 = vpop.eup %3720 }
0x1614   : > { %v2864_v4 = vmul.f32 %v3721_v1, %v2848_v48 }
0x1615   : > { %v3723_v5 = vpop.eup %3722 }
0x1616   : > { %v2863_v7 = vmul.f32 %v3723_v5, %v2847_v51  ;;  %v2872_v8 = vmul.f32 %v3293_v3, %v2864_v4 }
0x1618   : > { %v2871_v11 = vmul.f32 %v3293_v3, %v2863_v7  ;;  %v2880_v12 = vadd.f32 %v3294_v6, %v2872_v8 }
0x161a   : > { %v2879_v13 = vadd.f32 %v3294_v6, %v2871_v11  ;;  %2882 = vst.msk [vmem:[%s762_s0 + $0x8] sm:$0xff] %vm882_vm0, %v2880_v12 }
0x161c   : > { %2881 = vst.msk [vmem:[%s762_s0] sm:$0xff] %vm882_vm0, %v2879_v13  ;;  %3634 = vmatprep.mubr.msk.f32.mxu0 %vm882_vm0, %v2879_v13 }
0x161d   : > { %3635 = vmatmul.mubr.msk.f32.vlgmr.msra.gmra.mxu0 %vm882_vm0, %v2880_v12 }
0x161e   : > { %3638 = vmatpush3.msra.mxu0 %v2980_v14 }
0x161f   : > { %3639 = vmatprep.subr.mxu0 %v2979_v15 }
0x1620   : > { %3640 = vmatpush3.msra.mxu0 %v2979_v15 }
0x1621   : > { %3641 = vmatprep.subr.mxu0 %v2978_v16 }
0x1622   : > { %3642 = vmatpush3.msra.mxu0 %v2978_v16 }
0x1623   : > { %3643 = vmatprep.subr.mxu0 %v2977_v18 }
0x1624   : > { %3644 = vmatpush3.msra.mxu0 %v2977_v18 }
0x16dd   : > { %v3636_v20 = vpop.f32.mrf.mxu0 }
0x16de   : > { %v2972_v22 = vadd.f32 %v3636_v20, %v3295_v19 }
0x16df   : > { %v2966_v23 = vpop.f32.mrf.mxu0 }
0x16e0   : > { %v2967_v24 = vadd.f32 %v3295_v19, %v2966_v23  ;;  %v2976_v26 = vmax.f32 %v2972_v22, 0.0 }
0x16e2   : > { %v2975_v25 = vmax.f32 %v2967_v24, 0.0 }
0x16e4   : > { %3645 = vmatprep.mubr.msk.f32.mxu0 %vm882_vm0, %v2975_v25 }
0x16e5   : > { %3646 = vmatmul.mubr.msk.f32.vlgmr.msra.gmra.mxu0 %vm882_vm0, %v2976_v26 }
0x17a5   : > { %v3647_v28 = vpop.f32.mrf.mxu0 }
0x17a6   : > { %v3066_v29 = vadd.f32 %v3647_v28, %v3298_v27 }
0x17a7   : > { %v3060_v30 = vpop.f32.mrf.mxu0 }
0x17a8   : > { %v3302_v31 = vmul.f32 -1.442695, %v3066_v29  ;;  %v3061_v32 = vadd.f32 %v3298_v27, %v3060_v30 }
0x17aa   : > { %3724 = vpow2.f32 %v3302_v31  ;;  %v3301_v33 = vmul.f32 -1.442695, %v3061_v32 }
0x17ac   : > { %3726 = vpow2.f32 %v3301_v33 }
0x17b7   : > { %v3725_v34 = vpop.eup %3724 }
0x17b8   : > { %v3077_v35 = vadd.f32 1.0, %v3725_v34 }
0x17b9   : > { %v3727_v36 = vpop.eup %3726 }
0x17ba   : > { %3728 = vrcp.f32 %v3077_v35  ;;  %v3076_v37 = vadd.f32 1.0, %v3727_v36 }
0x17bc   : > { %3730 = vrcp.f32 %v3076_v37 }
0x17c7   : > { %v3729_v2 = vpop.eup %3728 }
0x17c8   : > { %v3083_v50 = vsel %vm3069_vm5, %v3066_v29, %v3729_v2 }
0x17c9   : > { %v3731_v38 = vpop.eup %3730  ;;  %3086 = vst.msk [vmem:[%s767_s4 + $0x8] sm:$0xff] %vm3084_vm6, %v3083_v50 }
0x17ca   : > { %v3082_v39 = vsel %vm3069_vm5, %v3061_v32, %v3731_v38 }
0x17cb   : > { %3085 = vst.msk [vmem:[%s767_s4] sm:$0xff] %vm3084_vm6, %v3082_v39 }
0x17cc PF: > { %s4504_s27 = sld [smem:[#allocation2_spill]] }
0x17d2   : > { %s35_s5 = sadd.s32 1, %s4504_s27  }
0x17d3   : > { %p32_p4 = scmp.ge.s32.totalorder %s35_s5, 4  }
0x17d5   :  { %34 = sbr.rel (!%p32_p4) target bundleno = 10 (0xa), region = 169 }

</bundles_post_ra>
